<compile_context>
chip_gen: v5e
topology: v5e:2x2
jax: 0.10.0
libtpu: 0.0.40
codegen_flags: <defaults>
</compile_context>

<pallas_src>
import jax
import jax.numpy as jnp
from jax.experimental import pallas as pl
from jax.experimental.pallas import tpu as pltpu

IN_DIM = 28 * 28          # 784
IN_PAD = 7 * 128          # 896: lane-aligned K for fc1 (zero-padded rows contribute 0)
HID = 512
OUT = 10
OUT_PAD = 128             # lane-dense output block; cols 10..127 masked via -1e30 bias
_NEG = -1e30              # "minus infinity" for padded class logits (exp underflows to 0)


def mnist_mlp_kernel(x_ref, w1_ref, b1_ref, w2_ref, b2_ref, w3_ref, b3_ref, o_ref):
    # x_ref: (TM, 896) bf16.  Weights bf16, biases f32.  All MXU accumulation in f32.
    h1 = jnp.dot(x_ref[...], w1_ref[...], preferred_element_type=jnp.float32)
    h1 = jnp.maximum(h1 + b1_ref[...], 0.0)

    h2 = jnp.dot(h1.astype(jnp.bfloat16), w2_ref[...], preferred_element_type=jnp.float32)
    h2 = jnp.maximum(h2 + b2_ref[...], 0.0)

    logits = jnp.dot(h2.astype(jnp.bfloat16), w3_ref[...],
                     preferred_element_type=jnp.float32) + b3_ref[...]

    # Numerically stable softmax over the (padded) class axis; padded columns carry a
    # -1e30 bias so exp() is exactly 0 there and they do not perturb max / sum.
    m = jnp.max(logits, axis=-1, keepdims=True)
    e = jnp.exp(logits - m)
    inv = pl.reciprocal(jnp.sum(e, axis=-1, keepdims=True), approx=True)
    o_ref[...] = (e * inv).astype(o_ref.dtype)


def _round_up(n, m):
    return pl.cdiv(n, m) * m


def mnist_net_forward(x, params, *, tile_m=256):
    """x: anything reshapeable to (B, 784) (e.g. (B,1,28,28)).  Returns (B, 10) f32 softmax."""
    w1, b1, w2, b2, w3, b3 = params

    x2d = x.reshape(-1, IN_DIM)                      # == x.view(-1, 28*28)
    B = x2d.shape[0]
    # Batch tile: multiple of 16 (bf16 sublane packing); cap at tile_m for large batches.
    TM = tile_m if B >= tile_m else _round_up(B, 16)
    B_pad = _round_up(B, TM)

    # Pad + cast inputs / weights.  Zero-padded K rows / N columns contribute nothing.
    xp = jnp.pad(x2d.astype(jnp.bfloat16), ((0, B_pad - B), (0, IN_PAD - IN_DIM)))
    w1p = jnp.pad(w1.astype(jnp.bfloat16), ((0, IN_PAD - IN_DIM), (0, 0)))
    w2p = w2.astype(jnp.bfloat16)
    w3p = jnp.pad(w3.astype(jnp.bfloat16), ((0, 0), (0, OUT_PAD - OUT)))
    b1p = b1.astype(jnp.float32)
    b2p = b2.astype(jnp.float32)
    b3p = jnp.pad(b3.astype(jnp.float32), ((0, 0), (0, OUT_PAD - OUT)), constant_values=_NEG)

    grid = (B_pad // TM,)
    resident = lambda shape: pl.BlockSpec(shape, lambda i: (0, 0))  # same block every step

    out = pl.pallas_call(
        mnist_mlp_kernel,
        out_shape=jax.ShapeDtypeStruct((B_pad, OUT_PAD), jnp.float32),
        grid=grid,
        in_specs=[
            pl.BlockSpec((TM, IN_PAD), lambda i: (i, 0)),      # x tile: pipelined over batch
            resident((IN_PAD, HID)), resident((1, HID)),       # fc1 (VMEM-resident)
            resident((HID, HID)),    resident((1, HID)),       # fc2
            resident((HID, OUT_PAD)), resident((1, OUT_PAD)),  # fc3 (class dim padded)
        ],
        out_specs=pl.BlockSpec((TM, OUT_PAD), lambda i: (i, 0)),
        compiler_params=pltpu.CompilerParams(
            dimension_semantics=("parallel",),   # 2 TensorCores on v7x; no-op on v5e/v6e
            vmem_limit_bytes=16 << 20,           # footprint ~4 MiB (1.6 MB weights + tiles)
        ),
    )(xp, w1p, b1p, w2p, b2p, w3p, b3p)

    return out[:B, :OUT]


def init_params(key):
    """PyTorch-Linear-like init U(-1/sqrt(fan_in), +1/sqrt(fan_in)); weights stored (in, out)."""
    ks = jax.random.split(key, 6)

    def linear(kw, kb, fan_in, fan_out):
        bound = 1.0 / jnp.sqrt(jnp.float32(fan_in))
        w = jax.random.uniform(kw, (fan_in, fan_out), jnp.float32, -bound, bound)
        b = jax.random.uniform(kb, (1, fan_out), jnp.float32, -bound, bound)
        return w, b

    w1, b1 = linear(ks[0], ks[1], IN_DIM, HID)
    w2, b2 = linear(ks[2], ks[3], HID, HID)
    w3, b3 = linear(ks[4], ks[5], HID, OUT)
    return (w1, b1, w2, b2, w3, b3)


def _reference(x, params):
    """Same math as the kernel (bf16 operands, f32 accumulation, exact softmax)."""
    w1, b1, w2, b2, w3, b3 = params
    xb = x.reshape(-1, IN_DIM).astype(jnp.bfloat16)
    h1 = jnp.maximum(jnp.dot(xb, w1.astype(jnp.bfloat16),
                             preferred_element_type=jnp.float32) + b1, 0.0)
    h2 = jnp.maximum(jnp.dot(h1.astype(jnp.bfloat16), w2.astype(jnp.bfloat16),
                             preferred_element_type=jnp.float32) + b2, 0.0)
    logits = jnp.dot(h2.astype(jnp.bfloat16), w3.astype(jnp.bfloat16),
                     preferred_element_type=jnp.float32) + b3
    return jax.nn.softmax(logits, axis=1)


if __name__ == "__main__":
    key = jax.random.PRNGKey(0)
    kx, kp = jax.random.split(key)
    # NCHW input, as the PyTorch module would receive from a MNIST DataLoader.
    x = jax.random.normal(kx, (8, 1, 28, 28), dtype=jnp.float32)
    params = init_params(kp)

    out = mnist_net_forward(x, params)
    out = jax.block_until_ready(out)
    assert out.shape == (8, OUT)

    ref = _reference(x, params)
    # Tolerance covers approx-reciprocal softmax (~2^-12 rel) and MXU accumulation order.
    assert jnp.allclose(out, ref, atol=2e-3, rtol=2e-2), float(jnp.max(jnp.abs(out - ref)))
    assert jnp.allclose(jnp.sum(out, axis=1), 1.0, atol=3e-3)

    print("KERNEL_OK")
</pallas_src>

<mosaic_0001>
module attributes {stable_mosaic.version = 11 : i64} {
  func.func @mnist_mlp_kernel(%arg0: i32, %arg1: memref<16x896xbf16, #tpu.memory_space<vmem>>, %arg2: memref<896x512xbf16, #tpu.memory_space<vmem>>, %arg3: memref<1x512xf32, #tpu.memory_space<vmem>>, %arg4: memref<512x512xbf16, #tpu.memory_space<vmem>>, %arg5: memref<1x512xf32, #tpu.memory_space<vmem>>, %arg6: memref<512x128xbf16, #tpu.memory_space<vmem>>, %arg7: memref<1x128xf32, #tpu.memory_space<vmem>>, %arg8: memref<16x128xf32, #tpu.memory_space<vmem>>) attributes {dimension_semantics = [#tpu.dimension_semantics<parallel>], iteration_bounds = array<i64: 1>, scalar_prefetch = 0 : i64, scratch_operands = 0 : i64, tpu.core_type = #tpu.core_type<tc>, window_params = [{transform_indices = @transform_0, window_bounds = array<i64: 16, 896>}, {pipeline_mode = #tpu.pipeline_mode<synchronous>, transform_indices = @transform_1, window_bounds = array<i64: 896, 512>}, {pipeline_mode = #tpu.pipeline_mode<synchronous>, transform_indices = @transform_2, window_bounds = array<i64: 1, 512>}, {pipeline_mode = #tpu.pipeline_mode<synchronous>, transform_indices = @transform_3, window_bounds = array<i64: 512, 512>}, {pipeline_mode = #tpu.pipeline_mode<synchronous>, transform_indices = @transform_4, window_bounds = array<i64: 1, 512>}, {pipeline_mode = #tpu.pipeline_mode<synchronous>, transform_indices = @transform_5, window_bounds = array<i64: 512, 128>}, {pipeline_mode = #tpu.pipeline_mode<synchronous>, transform_indices = @transform_6, window_bounds = array<i64: 1, 128>}, {transform_indices = @transform_7, window_bounds = array<i64: 16, 128>}]} {
    %c0 = arith.constant 0 : index
    %c0_0 = arith.constant 0 : index
    %0 = vector.load %arg1[%c0, %c0_0] : memref<16x896xbf16, #tpu.memory_space<vmem>>, vector<16x896xbf16>
    %c0_1 = arith.constant 0 : index
    %c0_2 = arith.constant 0 : index
    %1 = vector.load %arg2[%c0_1, %c0_2] : memref<896x512xbf16, #tpu.memory_space<vmem>>, vector<896x512xbf16>
    %cst = arith.constant dense<0.000000e+00> : vector<16x512xf32>
    %2 = tpu.matmul %0, %1, %cst {dimension_numbers = #tpu.dot_dimension_numbers<[1], [0], [0], [1], [0, 0, 1, 1], [], []>} : vector<16x896xbf16>, vector<896x512xbf16>, vector<16x512xf32> -> vector<16x512xf32>
    %c0_3 = arith.constant 0 : index
    %c0_4 = arith.constant 0 : index
    %3 = vector.load %arg3[%c0_3, %c0_4] : memref<1x512xf32, #tpu.memory_space<vmem>>, vector<1x512xf32>
    %4 = vector.broadcast %3 : vector<1x512xf32> to vector<16x512xf32>
    %5 = arith.addf %2, %4 : vector<16x512xf32>
    %cst_5 = arith.constant 0.000000e+00 : f32
    %6 = vector.broadcast %cst_5 : f32 to vector<16x512xf32>
    %7 = arith.maximumf %5, %6 : vector<16x512xf32>
    %8 = arith.truncf %7 : vector<16x512xf32> to vector<16x512xbf16>
    %c0_6 = arith.constant 0 : index
    %c0_7 = arith.constant 0 : index
    %9 = vector.load %arg4[%c0_6, %c0_7] : memref<512x512xbf16, #tpu.memory_space<vmem>>, vector<512x512xbf16>
    %cst_8 = arith.constant dense<0.000000e+00> : vector<16x512xf32>
    %10 = tpu.matmul %8, %9, %cst_8 {dimension_numbers = #tpu.dot_dimension_numbers<[1], [0], [0], [1], [0, 0, 1, 1], [], []>} : vector<16x512xbf16>, vector<512x512xbf16>, vector<16x512xf32> -> vector<16x512xf32>
    %c0_9 = arith.constant 0 : index
    %c0_10 = arith.constant 0 : index
    %11 = vector.load %arg5[%c0_9, %c0_10] : memref<1x512xf32, #tpu.memory_space<vmem>>, vector<1x512xf32>
    %12 = vector.broadcast %11 : vector<1x512xf32> to vector<16x512xf32>
    %13 = arith.addf %10, %12 : vector<16x512xf32>
    %cst_11 = arith.constant 0.000000e+00 : f32
    %14 = vector.broadcast %cst_11 : f32 to vector<16x512xf32>
    %15 = arith.maximumf %13, %14 : vector<16x512xf32>
    %16 = arith.truncf %15 : vector<16x512xf32> to vector<16x512xbf16>
    %c0_12 = arith.constant 0 : index
    %c0_13 = arith.constant 0 : index
    %17 = vector.load %arg6[%c0_12, %c0_13] : memref<512x128xbf16, #tpu.memory_space<vmem>>, vector<512x128xbf16>
    %cst_14 = arith.constant dense<0.000000e+00> : vector<16x128xf32>
    %18 = tpu.matmul %16, %17, %cst_14 {dimension_numbers = #tpu.dot_dimension_numbers<[1], [0], [0], [1], [0, 0, 1, 1], [], []>} : vector<16x512xbf16>, vector<512x128xbf16>, vector<16x128xf32> -> vector<16x128xf32>
    %c0_15 = arith.constant 0 : index
    %c0_16 = arith.constant 0 : index
    %19 = vector.load %arg7[%c0_15, %c0_16] : memref<1x128xf32, #tpu.memory_space<vmem>>, vector<1x128xf32>
    %20 = vector.broadcast %19 : vector<1x128xf32> to vector<16x128xf32>
    %21 = arith.addf %18, %20 : vector<16x128xf32>
    %cst_17 = arith.constant dense<0xFF800000> : vector<16xf32>
    %22 = vector.multi_reduction <maximumf>, %21, %cst_17 [1] : vector<16x128xf32> to vector<16xf32>
    %23 = vector.shape_cast %22 : vector<16xf32> to vector<16x1xf32>
    %24 = vector.broadcast %23 : vector<16x1xf32> to vector<16x128xf32>
    %25 = arith.subf %21, %24 : vector<16x128xf32>
    %26 = math.exp %25 : vector<16x128xf32>
    %cst_18 = arith.constant dense<0.000000e+00> : vector<16xf32>
    %27 = vector.multi_reduction <add>, %26, %cst_18 [1] : vector<16x128xf32> to vector<16xf32>
    %28 = vector.shape_cast %27 : vector<16xf32> to vector<16x1xf32>
    %29 = tpu.reciprocal %28 {approx = true} : vector<16x1xf32> -> vector<16x1xf32>
    %30 = vector.broadcast %29 : vector<16x1xf32> to vector<16x128xf32>
    %31 = arith.mulf %26, %30 : vector<16x128xf32>
    %c0_19 = arith.constant 0 : index
    %c0_20 = arith.constant 0 : index
    %32 = vector.load %arg8[%c0_19, %c0_20] : memref<16x128xf32, #tpu.memory_space<vmem>>, vector<16x128xf32>
    tpu.vector_store %arg8[%c0_19, %c0_20], %31 {strides = array<i32>} : memref<16x128xf32, #tpu.memory_space<vmem>>, vector<16x128xf32>,
    return
  }
  func.func @transform_0(%arg0: i32) -> (i32, i32) {
    %c0_i32 = arith.constant 0 : i32
    %c0_i32_0 = arith.constant 0 : i32
    return %arg0, %c0_i32 : i32, i32
  }
  func.func @transform_1(%arg0: i32) -> (i32, i32) {
    %c0_i32 = arith.constant 0 : i32
    %c0_i32_0 = arith.constant 0 : i32
    %c0_i32_1 = arith.constant 0 : i32
    return %c0_i32, %c0_i32_0 : i32, i32
  }
  func.func @transform_2(%arg0: i32) -> (i32, i32) {
    %c0_i32 = arith.constant 0 : i32
    %c0_i32_0 = arith.constant 0 : i32
    %c0_i32_1 = arith.constant 0 : i32
    return %c0_i32, %c0_i32_0 : i32, i32
  }
  func.func @transform_3(%arg0: i32) -> (i32, i32) {
    %c0_i32 = arith.constant 0 : i32
    %c0_i32_0 = arith.constant 0 : i32
    %c0_i32_1 = arith.constant 0 : i32
    return %c0_i32, %c0_i32_0 : i32, i32
  }
  func.func @transform_4(%arg0: i32) -> (i32, i32) {
    %c0_i32 = arith.constant 0 : i32
    %c0_i32_0 = arith.constant 0 : i32
    %c0_i32_1 = arith.constant 0 : i32
    return %c0_i32, %c0_i32_0 : i32, i32
  }
  func.func @transform_5(%arg0: i32) -> (i32, i32) {
    %c0_i32 = arith.constant 0 : i32
    %c0_i32_0 = arith.constant 0 : i32
    %c0_i32_1 = arith.constant 0 : i32
    return %c0_i32, %c0_i32_0 : i32, i32
  }
  func.func @transform_6(%arg0: i32) -> (i32, i32) {
    %c0_i32 = arith.constant 0 : i32
    %c0_i32_0 = arith.constant 0 : i32
    %c0_i32_1 = arith.constant 0 : i32
    return %c0_i32, %c0_i32_0 : i32, i32
  }
  func.func @transform_7(%arg0: i32) -> (i32, i32) {
    %c0_i32 = arith.constant 0 : i32
    %c0_i32_0 = arith.constant 0 : i32
    return %arg0, %c0_i32 : i32, i32
  }
}

</mosaic_0001>

<bundles_post_ra>
// kernel: tpu_custom_call.1
= control target key start
LH: loop header
LB: loop body
LE: loop exit
PB: predicated region body
PF: predicated region fallthrough
CT: control target
= control target key end

     0   :  { %12 = vsyncpa [#allocation3], 0  ;;  %s5623_s0 = inlined_call_operand.hbm [shape: bf16[16,896], index: 0, kind: input, shape index: {}]   ;;  %s5624_s1 = inlined_call_operand.hbm [shape: bf16[896,512], index: 1, kind: input, shape index: {}]   ;;  %s5625_s2 = inlined_call_operand.hbm [shape: f32[1,512], index: 2, kind: input, shape index: {}]   ;;  %s5626_s3 = inlined_call_operand.hbm [shape: bf16[512,512], index: 3, kind: input, shape index: {}]   ;;  %s5627_s4 = inlined_call_operand.hbm [shape: f32[1,512], index: 4, kind: input, shape index: {}]   ;;  %s5628_s5 = inlined_call_operand.hbm [shape: bf16[512,128], index: 5, kind: input, shape index: {}]   ;;  %s5629_s6 = inlined_call_operand.vmem [shape: f32[1,128], index: 6, kind: input, shape index: {}]   ;;  %s5630_s7 = inlined_call_operand.hbm [shape: f32[16,128], index: 7, kind: output, shape index: {}]  }
   0x1   :  { %13 = vsyncpa [#allocation6], 0 }
   0x2   :  { %14 = vsyncpa [#allocation9], 0 }
   0x3   :  { %15 = vsyncpa [#allocation12], 0  ;;  %s34_s26 = sshll.u32 %s5624_s1, 4  ;;  %s35_s26 = int_to_ptr.hbm [resolvable:$true] %s34_s26 }
   0x4   :  { %16 = vsyncpa [#allocation4], 0  ;;  %s5449_s27 = smov [#allocation5]   ;;  %s58_s8 = sshll.u32 %s5626_s3, 4  ;;  %s59_s8 = int_to_ptr.hbm [resolvable:$true] %s58_s8 }
   0x5   :  { %s36_s28 = sshll.u32 %s5449_s27, 4  ;;  %s5450_s9 = smov 256   ;;  %s37_s28 = int_to_ptr.vmem [resolvable:$true] %s36_s28 }
   0x6   :  { %s5451_s10 = smov 16   ;;  %s5452_s11 = smov [#allocation8]  }
   0x7   :  { %42 = dma.hbm_to_vmem [thread:$0]  %s35_s26, 28672, %s37_s28, [#allocation6], %s5450_s9, %s5450_s9, %s5451_s10  }
   0x8   :  { %s60_s12 = sshll.u32 %s5452_s11, 4  ;;  %s21_s15 = sshll.u32 %s5623_s0, 4  ;;  %s61_s12 = int_to_ptr.vmem [resolvable:$true] %s60_s12  ;;  %s22_s15 = int_to_ptr.hbm [resolvable:$true] %s21_s15 }
   0x9   :  { %66 = dma.hbm_to_vmem [thread:$0]  %s59_s8, 16384, %s61_s12, [#allocation9], %s5450_s9, %s5450_s9, %s5451_s10  }
   0xa   :  { %s5453_s1 = smov [#allocation2]   ;;  %s48_s3 = sshll.u32 %s5625_s2, 4  ;;  %s49_s3 = int_to_ptr.hbm [resolvable:$true] %s48_s3 }
   0xb   :  { %s23_s16 = sshll.u32 %s5453_s1, 4  ;;  %s5454_s19 = smov 448   ;;  %s24_s16 = int_to_ptr.vmem [resolvable:$true] %s23_s16 }
   0xc   :  { %s5455_s20 = smov 28   ;;  %s5456_s21 = smov [#allocation7]  }
   0xd   :  { %29 = dma.hbm_to_vmem [thread:$0]  %s22_s15, 896, %s24_s16, [#allocation3], %s5454_s19, %s5454_s19, %s5455_s20  }
   0xe   :  { %s50_s22 = sshll.u32 %s5456_s21, 4  ;;  %s72_s0 = sshll.u32 %s5627_s4, 4  ;;  %s51_s22 = int_to_ptr.vmem [resolvable:$true] %s50_s22  ;;  %s73_s0 = int_to_ptr.hbm [resolvable:$true] %s72_s0 }
   0xf   :  { %53 = dma.hbm_to_vmem [thread:$0]  %s49_s3, 64, %s51_s22, [#allocation6]  }
  0x10   :  { %s82_s27 = sshll.u32 %s5628_s5, 4  ;;  %s5457_s28 = smov [#allocation10]   ;;  %s83_s27 = int_to_ptr.hbm [resolvable:$true] %s82_s27 }
  0x11   :  { %s74_s29 = sshll.u32 %s5457_s28, 4  ;;  %s5458_s2 = smov [#allocation11]   ;;  %s75_s29 = int_to_ptr.vmem [resolvable:$true] %s74_s29 }
  0x12   :  { %77 = dma.hbm_to_vmem [thread:$0]  %s73_s0, 64, %s75_s29, [#allocation9]  }
  0x13   :  { %s84_s30 = sshll.u32 %s5458_s2, 4  ;;  %s5459_s8 = smov 64   ;;  %s85_s30 = int_to_ptr.vmem [resolvable:$true] %s84_s30 }
  0x14   :  { %s5460_s9 = smov 4  }
  0x15   :  { %90 = dma.hbm_to_vmem [thread:$0]  %s83_s27, 4096, %s85_s30, [#allocation12], %s5459_s8, %s5459_s8, %s5460_s9  }
  0x16   :  { %5439 = dma.done.wait [#allocation3], 896  }
  0x17   :  { %5440 = vsyncadd [#allocation3], 4294966400 }
  0x18   :  { %5441 = dma.done.wait [#allocation6], 28736  }
  0x19   :  { %5442 = vsyncadd [#allocation6], 4294938560 }
  0x1a   :  { %5443 = dma.done.wait [#allocation9], 16448  }
  0x1b   :  { %5444 = vsyncadd [#allocation9], 4294950848 }
  0x1c   :  { %5445 = dma.done.wait [#allocation12], 4096  }
  0x1d   :  { %5446 = vsyncadd [#allocation12], 4294963200  ;;  %v3433_v0 = vld [vmem:[#allocation5 + $0xe0] sm:$0xf]  ;;  %v4892_v1 = vld [vmem:[#allocation5 + $0xec] sm:$0xf0] }
  0x1e   :  { %v3561_v2 = vld [vmem:[#allocation5 + $0x1e0] sm:$0xf]  ;;  %v3434_v3 = vor.u32 %v4892_v1, %v3433_v0  ;;  %v4924_v4 = vld [vmem:[#allocation5 + $0x1ec] sm:$0xf0]  ;;  %s3275_s13 = sshll.u32 %s5630_s7, 4  ;;  %s5462_s14 = smov 128   ;;  %s3276_s13 = int_to_ptr.hbm [resolvable:$true] %s3275_s13 }
  0x1f   :  { %v3689_v5 = vld [vmem:[#allocation5 + $0x2e0] sm:$0xf]  ;;  %v4956_v6 = vld [vmem:[#allocation5 + $0x2ec] sm:$0xf0]  ;;  %v3562_v7 = vor.u32 %v4924_v4, %v3561_v2  ;;  %s5463_s15 = smov 8  }
  0x20   :  { %v3690_v8 = vor.u32 %v4956_v6, %v3689_v5  ;;  %v3817_v9 = vld [vmem:[#allocation5 + $0x3e0] sm:$0xf]  ;;  %v4988_v10 = vld [vmem:[#allocation5 + $0x3ec] sm:$0xf0]  ;;  %1515 = vmatpush.bf16.msra.mxu0 %v3434_v3 }
  0x21   :  { %v3417_v11 = vld [vmem:[#allocation5 + $0xc0] sm:$0xf]  ;;  %v3818_v12 = vor.u32 %v4988_v10, %v3817_v9  ;;  %v4888_v13 = vld [vmem:[#allocation5 + $0xcc] sm:$0xf0]  ;;  %1529 = vmatpush.bf16.msra.mxu1 %v3562_v7 }
  0x22   :  { %v3545_v14 = vld [vmem:[#allocation5 + $0x1c0] sm:$0xf]  ;;  %v4920_v15 = vld [vmem:[#allocation5 + $0x1cc] sm:$0xf0]  ;;  %1543 = vmatpush.bf16.msra.mxu2 %v3690_v8  ;;  %v3418_v16 = vor.u32 %v4888_v13, %v3417_v11 }
  0x23   :  { %v3546_v17 = vor.u32 %v4920_v15, %v3545_v14  ;;  %v3673_v18 = vld [vmem:[#allocation5 + $0x2c0] sm:$0xf]  ;;  %v4952_v19 = vld [vmem:[#allocation5 + $0x2cc] sm:$0xf0]  ;;  %1557 = vmatpush.bf16.msra.mxu3 %v3818_v12 }
  0x24   :  { %v3801_v20 = vld [vmem:[#allocation5 + $0x3c0] sm:$0xf]  ;;  %v3674_v21 = vor.u32 %v4952_v19, %v3673_v18  ;;  %v4984_v22 = vld [vmem:[#allocation5 + $0x3cc] sm:$0xf0]  ;;  %1516 = vmatpush.bf16.msra.mxu0 %v3418_v16 }
  0x25   :  { %v3401_v23 = vld [vmem:[#allocation5 + $0xa0] sm:$0xf]  ;;  %v4884_v24 = vld [vmem:[#allocation5 + $0xac] sm:$0xf0]  ;;  %v3802_v25 = vor.u32 %v4984_v22, %v3801_v20  ;;  %1530 = vmatpush.bf16.msra.mxu1 %v3546_v17 }
  0x26   :  { %v3529_v26 = vld [vmem:[#allocation5 + $0x1a0] sm:$0xf]  ;;  %v4916_v27 = vld [vmem:[#allocation5 + $0x1ac] sm:$0xf0]  ;;  %v3402_v29 = vor.u32 %v4884_v24, %v3401_v23  ;;  %1544 = vmatpush.bf16.msra.mxu2 %v3674_v21 }
  0x27   :  { %v3657_v28 = vld [vmem:[#allocation5 + $0x2a0] sm:$0xf]  ;;  %v4948_v30 = vld [vmem:[#allocation5 + $0x2ac] sm:$0xf0]  ;;  %v3530_v33 = vor.u32 %v4916_v27, %v3529_v26  ;;  %1558 = vmatpush.bf16.msra.mxu3 %v3802_v25 }
  0x28   :  { %v3785_v31 = vld [vmem:[#allocation5 + $0x3a0] sm:$0xf]  ;;  %v4980_v32 = vld [vmem:[#allocation5 + $0x3ac] sm:$0xf0]  ;;  %v3658_v34 = vor.u32 %v4948_v30, %v3657_v28  ;;  %1517 = vmatpush.bf16.msra.mxu0 %v3402_v29 }
  0x29   :  { %v3385_v35 = vld [vmem:[#allocation5 + $0x80] sm:$0xf]  ;;  %v4880_v36 = vld [vmem:[#allocation5 + $0x8c] sm:$0xf0]  ;;  %v3786_v38 = vor.u32 %v4980_v32, %v3785_v31  ;;  %1531 = vmatpush.bf16.msra.mxu1 %v3530_v33 }
  0x2a   :  { %v3513_v37 = vld [vmem:[#allocation5 + $0x180] sm:$0xf]  ;;  %v4912_v39 = vld [vmem:[#allocation5 + $0x18c] sm:$0xf0]  ;;  %v3386_v44 = vor.u32 %v4880_v36, %v3385_v35  ;;  %1545 = vmatpush.bf16.msra.mxu2 %v3658_v34 }
  0x2b   :  { %v3641_v40 = vld [vmem:[#allocation5 + $0x280] sm:$0xf]  ;;  %v4944_v41 = vld [vmem:[#allocation5 + $0x28c] sm:$0xf0]  ;;  %v3514_v45 = vor.u32 %v4912_v39, %v3513_v37  ;;  %1559 = vmatpush.bf16.msra.mxu3 %v3786_v38  ;;  %v4890_v37 = vld [vmem:[#allocation5 + $0xe4] sm:$0xf] }
  0x2c   :  { %v3769_v42 = vld [vmem:[#allocation5 + $0x380] sm:$0xf]  ;;  %v4976_v43 = vld [vmem:[#allocation5 + $0x38c] sm:$0xf0]  ;;  %v3642_v46 = vor.u32 %v4944_v41, %v3641_v40  ;;  %1518 = vmatpush.bf16.msra.mxu0 %v3386_v44  ;;  %v3435_v38 = vld [vmem:[#allocation5 + $0xf0] sm:$0xf0] }
  0x2d   :  { %v3369_v47 = vld [vmem:[#allocation5 + $0x60] sm:$0xf]  ;;  %v4876_v48 = vld [vmem:[#allocation5 + $0x6c] sm:$0xf0]  ;;  %v3770_v50 = vor.u32 %v4976_v43, %v3769_v42  ;;  %1532 = vmatpush.bf16.msra.mxu1 %v3514_v45 }
  0x2e   :  { %v3497_v49 = vld [vmem:[#allocation5 + $0x160] sm:$0xf]  ;;  %v4908_v51 = vld [vmem:[#allocation5 + $0x16c] sm:$0xf0]  ;;  %v3370_v56 = vor.u32 %v4876_v48, %v3369_v47  ;;  %1546 = vmatpush.bf16.msra.mxu2 %v3642_v46  ;;  %v3438_v48 = vor.u32 %v4890_v37, %v3435_v38 }
  0x2f   :  { %v3625_v52 = vld [vmem:[#allocation5 + $0x260] sm:$0xf]  ;;  %v4940_v53 = vld [vmem:[#allocation5 + $0x26c] sm:$0xf0]  ;;  %v3498_v57 = vor.u32 %v4908_v51, %v3497_v49  ;;  %1560 = vmatpush.bf16.msra.mxu3 %v3770_v50  ;;  %v4886_v50 = vld [vmem:[#allocation5 + $0xc4] sm:$0xf] }
  0x30   :  { %v3753_v54 = vld [vmem:[#allocation5 + $0x360] sm:$0xf]  ;;  %v4972_v55 = vld [vmem:[#allocation5 + $0x36c] sm:$0xf0]  ;;  %v3626_v58 = vor.u32 %v4940_v53, %v3625_v52  ;;  %1519 = vmatpush.bf16.msra.mxu0 %v3370_v56  ;;  %v3419_v51 = vld [vmem:[#allocation5 + $0xd0] sm:$0xf0] }
  0x31   :  { %v3353_v59 = vld [vmem:[#allocation5 + $0x40] sm:$0xf]  ;;  %v4872_v60 = vld [vmem:[#allocation5 + $0x4c] sm:$0xf0]  ;;  %v3754_v62 = vor.u32 %v4972_v55, %v3753_v54  ;;  %1533 = vmatpush.bf16.msra.mxu1 %v3498_v57  ;;  %v3293_v52 = vld [vmem:[#allocation2] sm:$0xf] }
  0x32   :  { %v3481_v61 = vld [vmem:[#allocation5 + $0x140] sm:$0xf]  ;;  %v4904_v63 = vld [vmem:[#allocation5 + $0x14c] sm:$0xf0]  ;;  %v3354_v4 = vor.u32 %v4872_v60, %v3353_v59  ;;  %1547 = vmatpush.bf16.msra.mxu2 %v3626_v58  ;;  %v4858_v53 = vld [vmem:[#allocation2 + $0x18] sm:$0xf0] }
  0x33   :  { %v3609_v0 = vld [vmem:[#allocation5 + $0x240] sm:$0xf]  ;;  %v4936_v1 = vld [vmem:[#allocation5 + $0x24c] sm:$0xf0]  ;;  %v3482_v5 = vor.u32 %v4904_v63, %v3481_v61  ;;  %1561 = vmatpush.bf16.msra.mxu3 %v3754_v62  ;;  %v5522_v57 = vor.u32 %v4858_v53, %v3293_v52  ;;  %v4859_v58 = vld [vmem:[#allocation2 + $0x20] sm:$0xf0] }
  0x34   :  { %v3737_v2 = vld [vmem:[#allocation5 + $0x340] sm:$0xf]  ;;  %v4968_v3 = vld [vmem:[#allocation5 + $0x34c] sm:$0xf0]  ;;  %v3610_v6 = vor.u32 %v4936_v1, %v3609_v0  ;;  %1520 = vmatpush.bf16.msra.mxu0 %v3354_v4  ;;  %v3422_v1 = vor.u32 %v4886_v50, %v3419_v51  ;;  %v4882_v4 = vld [vmem:[#allocation5 + $0xa4] sm:$0xf] }
  0x35   :  { %v3337_v7 = vld [vmem:[#allocation5 + $0x20] sm:$0xf]  ;;  %v4868_v8 = vld [vmem:[#allocation5 + $0x2c] sm:$0xf0]  ;;  %v3738_v10 = vor.u32 %v4968_v3, %v3737_v2  ;;  %1534 = vmatpush.bf16.msra.mxu1 %v3482_v5  ;;  %v3403_v5 = vld [vmem:[#allocation5 + $0xb0] sm:$0xf0] }
  0x36   :  { %v3465_v9 = vld [vmem:[#allocation5 + $0x120] sm:$0xf]  ;;  %v4900_v11 = vld [vmem:[#allocation5 + $0x12c] sm:$0xf0]  ;;  %v3338_v16 = vor.u32 %v4868_v8, %v3337_v7  ;;  %1548 = vmatpush.bf16.msra.mxu2 %v3610_v6  ;;  %v4855_v6 = vld [vmem:[#allocation2 + $0x4] sm:$0xf] }
  0x37   :  { %v3593_v12 = vld [vmem:[#allocation5 + $0x220] sm:$0xf]  ;;  %v4932_v13 = vld [vmem:[#allocation5 + $0x22c] sm:$0xf0]  ;;  %v3466_v19 = vor.u32 %v4900_v11, %v3465_v9  ;;  %1562 = vmatpush.bf16.msra.mxu3 %v3738_v10  ;;  %v3295_v7 = vld [vmem:[#allocation2 + $0x1c] sm:$0xf0] }
  0x38   :  { %v3721_v14 = vld [vmem:[#allocation5 + $0x320] sm:$0xf]  ;;  %v4964_v15 = vld [vmem:[#allocation5 + $0x32c] sm:$0xf0]  ;;  %v3594_v20 = vor.u32 %v4932_v13, %v3593_v12  ;;  %1521 = vmatpush.bf16.msra.mxu0 %v3338_v16  ;;  %v5528_v11 = vor.u32 %v4855_v6, %v3295_v7  ;;  %v4862_v7 = vld [vmem:[#allocation5 + $0x4] sm:$0xf] }
  0x39   :  { %v3321_v17 = vld [vmem:[#allocation5] sm:$0xf]  ;;  %v4864_v18 = vld [vmem:[#allocation5 + $0xc] sm:$0xf0]  ;;  %v3722_v24 = vor.u32 %v4964_v15, %v3721_v14  ;;  %1535 = vmatpush.bf16.msra.mxu1 %v3466_v19  ;;  %v4856_v19 = vld [vmem:[#allocation2 + $0xc] sm:$0xf] }
  0x3a   :  { %v3449_v21 = vld [vmem:[#allocation5 + $0x100] sm:$0xf]  ;;  %v4896_v22 = vld [vmem:[#allocation5 + $0x10c] sm:$0xf0]  ;;  %v3322_v31 = vor.u32 %v4864_v18, %v3321_v17  ;;  %1549 = vmatpush.bf16.msra.mxu2 %v3594_v20  ;;  %v3406_v17 = vor.u32 %v4882_v4, %v3403_v5 }
  0x3b   :  { %v3577_v23 = vld [vmem:[#allocation5 + $0x200] sm:$0xf]  ;;  %v4928_v25 = vld [vmem:[#allocation5 + $0x20c] sm:$0xf0]  ;;  %v3450_v35 = vor.u32 %v4896_v22, %v3449_v21  ;;  %1563 = vmatpush.bf16.msra.mxu3 %v3722_v24  ;;  %v4878_v21 = vld [vmem:[#allocation5 + $0x84] sm:$0xf] }
  0x3c   :  { %v3705_v26 = vld [vmem:[#allocation5 + $0x300] sm:$0xf]  ;;  %v4960_v27 = vld [vmem:[#allocation5 + $0x30c] sm:$0xf0]  ;;  %v3578_v36 = vor.u32 %v4928_v25, %v3577_v23  ;;  %1522 = vmatpush.bf16.msra.mxu0 %v3322_v31  ;;  %v3387_v22 = vld [vmem:[#allocation5 + $0x90] sm:$0xf0] }
  0x3d   :  { %v3945_v28 = vld [vmem:[#allocation5 + $0x4e0] sm:$0xf]  ;;  %v5020_v29 = vld [vmem:[#allocation5 + $0x4ec] sm:$0xf0]  ;;  %v3706_v39 = vor.u32 %v4960_v27, %v3705_v26  ;;  %1536 = vmatpush.bf16.msra.mxu1 %v3450_v35  ;;  %v3371_v35 = vld [vmem:[#allocation5 + $0x70] sm:$0xf0] }
  0x3e   :  { %v4073_v30 = vld [vmem:[#allocation5 + $0x5e0] sm:$0xf]  ;;  %v5052_v32 = vld [vmem:[#allocation5 + $0x5ec] sm:$0xf0]  ;;  %v3946_v40 = vor.u32 %v5020_v29, %v3945_v28  ;;  %1550 = vmatpush.bf16.msra.mxu2 %v3578_v36 }
  0x3f   :  { %v4201_v33 = vld [vmem:[#allocation5 + $0x6e0] sm:$0xf]  ;;  %v5084_v34 = vld [vmem:[#allocation5 + $0x6ec] sm:$0xf0]  ;;  %v4074_v43 = vor.u32 %v5052_v32, %v4073_v30  ;;  %1564 = vmatpush.bf16.msra.mxu3 %v3706_v39  ;;  %1523 = vmatmul.bf16.vlgmr.msra.gmra.mxu0 %v5522_v57  ;;  %v3390_v30 = vor.u32 %v4878_v21, %v3387_v22  ;;  %v3309_v22 = vld [vmem:[#allocation2 + $0x10] sm:$0xf] }
  0x40   :  { %v3929_v41 = vld [vmem:[#allocation5 + $0x4c0] sm:$0xf]  ;;  %v5016_v42 = vld [vmem:[#allocation5 + $0x4cc] sm:$0xf0]  ;;  %v4202_v44 = vor.u32 %v5084_v34, %v4201_v33  ;;  %1571 = vmatpush.bf16.msrb.mxu0 %v3946_v40  ;;  %1537 = vmatmul.bf16.vlgmr.msra.gmra.mxu1 %v5528_v11  ;;  %v4874_v34 = vld [vmem:[#allocation5 + $0x64] sm:$0xf] }
  0x41   :  { %v4057_v45 = vld [vmem:[#allocation5 + $0x5c0] sm:$0xf]  ;;  %v5048_v46 = vld [vmem:[#allocation5 + $0x5cc] sm:$0xf0]  ;;  %v3930_v55 = vor.u32 %v5016_v42, %v3929_v41  ;;  %1585 = vmatpush.bf16.msrb.mxu1 %v4074_v43  ;;  %v3374_v42 = vor.u32 %v4874_v34, %v3371_v35  ;;  %v3547_v34 = vld [vmem:[#allocation5 + $0x1d0] sm:$0xf0] }
  0x42   :  { %v4185_v47 = vld [vmem:[#allocation5 + $0x6c0] sm:$0xf]  ;;  %v5080_v49 = vld [vmem:[#allocation5 + $0x6cc] sm:$0xf0]  ;;  %1599 = vmatpush.bf16.msrb.mxu2 %v4202_v44  ;;  %v4058_v59 = vor.u32 %v5048_v46, %v4057_v45  ;;  %v4870_v46 = vld [vmem:[#allocation5 + $0x44] sm:$0xf] }
  0x43   :  { %v3301_v54 = vld [vmem:[#allocation2 + $0x8] sm:$0xf]  ;;  %v3913_v56 = vld [vmem:[#allocation5 + $0x4a0] sm:$0xf]  ;;  %v4186_v60 = vor.u32 %v5080_v49, %v4185_v47  ;;  %1613 = vmatpush.bf16.msrb.mxu3 %v3438_v48  ;;  %v3355_v47 = vld [vmem:[#allocation5 + $0x50] sm:$0xf0] }
  0x44   :  { %v5012_v61 = vld [vmem:[#allocation5 + $0x4ac] sm:$0xf0]  ;;  %v4041_v62 = vld [vmem:[#allocation5 + $0x5a0] sm:$0xf]  ;;  %v5524_v0 = vor.u32 %v4859_v58, %v3301_v54  ;;  %1572 = vmatpush.bf16.msrb.mxu0 %v3930_v55  ;;  %v3358_v54 = vor.u32 %v4870_v46, %v3355_v47  ;;  %v4950_v35 = vld [vmem:[#allocation5 + $0x2c4] sm:$0xf] }
  0x45   :  { %v5044_v63 = vld [vmem:[#allocation5 + $0x5ac] sm:$0xf0]  ;;  %v4169_v2 = vld [vmem:[#allocation5 + $0x6a0] sm:$0xf]  ;;  %v3914_v8 = vor.u32 %v5012_v61, %v3913_v56  ;;  %1586 = vmatpush.bf16.msrb.mxu1 %v4058_v59  ;;  %v4866_v59 = vld [vmem:[#allocation5 + $0x24] sm:$0xf] }
  0x46   :  { %v5076_v3 = vld [vmem:[#allocation5 + $0x6ac] sm:$0xf0]  ;;  %1551 = vmatmul.bf16.vlgmr.msra.gmra.mxu2 %v5524_v0  ;;  %v3897_v9 = vld [vmem:[#allocation5 + $0x480] sm:$0xf]  ;;  %v4042_v12 = vor.u32 %v5044_v63, %v4041_v62 }
  0x47   :  { %v5008_v10 = vld [vmem:[#allocation5 + $0x48c] sm:$0xf0]  ;;  %1600 = vmatpush.bf16.msrb.mxu2 %v4186_v60  ;;  %v4170_v13 = vor.u32 %v5076_v3, %v4169_v2  ;;  %v4025_v14 = vld [vmem:[#allocation5 + $0x580] sm:$0xf]  ;;  %1614 = vmatpush.bf16.msrb.mxu3 %v3422_v1  ;;  %v3339_v60 = vld [vmem:[#allocation5 + $0x30] sm:$0xf0] }
  0x48   :  { %v5040_v15 = vld [vmem:[#allocation5 + $0x58c] sm:$0xf0]  ;;  %v4153_v16 = vld [vmem:[#allocation5 + $0x680] sm:$0xf]  ;;  %1573 = vmatpush.bf16.msrb.mxu0 %v3914_v8  ;;  %v3898_v24 = vor.u32 %v5008_v10, %v3897_v9  ;;  %v3342_v8 = vor.u32 %v4866_v59, %v3339_v60  ;;  %v3323_v9 = vld [vmem:[#allocation5 + $0x10] sm:$0xf0] }
  0x49   :  { %v5072_v18 = vld [vmem:[#allocation5 + $0x68c] sm:$0xf0]  ;;  %1587 = vmatpush.bf16.msrb.mxu1 %v4042_v12  ;;  %v4026_v25 = vor.u32 %v5040_v15, %v4025_v14  ;;  %v3881_v27 = vld [vmem:[#allocation5 + $0x460] sm:$0xf]  ;;  %v4922_v10 = vld [vmem:[#allocation5 + $0x1e4] sm:$0xf] }
  0x4a   :  { %v3303_v20 = vld [vmem:[#allocation2 + $0x24] sm:$0xf0]  ;;  %v4154_v26 = vor.u32 %v5072_v18, %v4153_v16  ;;  %v4009_v29 = vld [vmem:[#allocation5 + $0x560] sm:$0xf]  ;;  %v3563_v12 = vld [vmem:[#allocation5 + $0x1f0] sm:$0xf0] }
  0x4b   :  { %v5531_v23 = vor.u32 %v4856_v19, %v3303_v20  ;;  %1601 = vmatpush.bf16.msrb.mxu2 %v4170_v13  ;;  %v5004_v28 = vld [vmem:[#allocation5 + $0x46c] sm:$0xf0]  ;;  %1615 = vmatpush.bf16.msrb.mxu3 %v3406_v17  ;;  %v4137_v32 = vld [vmem:[#allocation5 + $0x660] sm:$0xf]  ;;  %v4954_v13 = vld [vmem:[#allocation5 + $0x2e4] sm:$0xf] }
  0x4c   :  { %v5036_v31 = vld [vmem:[#allocation5 + $0x56c] sm:$0xf0]  ;;  %1574 = vmatpush.bf16.msrb.mxu0 %v3898_v24  ;;  %v3882_v36 = vor.u32 %v5004_v28, %v3881_v27  ;;  %v3865_v39 = vld [vmem:[#allocation5 + $0x440] sm:$0xf]  ;;  %v3691_v14 = vld [vmem:[#allocation5 + $0x2f0] sm:$0xf0]  ;;  %v3566_v27 = vor.u32 %v4922_v10, %v3563_v12 }
  0x4d   :  { %v5068_v33 = vld [vmem:[#allocation5 + $0x66c] sm:$0xf0]  ;;  %1565 = vmatmul.bf16.vlgmr.msra.gmra.mxu3 %v5531_v23  ;;  %1588 = vmatpush.bf16.msrb.mxu1 %v4026_v25  ;;  %v4010_v37 = vor.u32 %v5036_v31, %v4009_v29  ;;  %v3993_v41 = vld [vmem:[#allocation5 + $0x540] sm:$0xf]  ;;  %v4986_v15 = vld [vmem:[#allocation5 + $0x3e4] sm:$0xf]  ;;  %v3694_v31 = vor.u32 %v4954_v13, %v3691_v14 }
  0x4e   :  { %v4138_v38 = vor.u32 %v5068_v33, %v4137_v32  ;;  %v5000_v40 = vld [vmem:[#allocation5 + $0x44c] sm:$0xf0]  ;;  %v4121_v44 = vld [vmem:[#allocation5 + $0x640] sm:$0xf]  ;;  %v3819_v17 = vld [vmem:[#allocation5 + $0x3f0] sm:$0xf0] }
  0x4f   :  { %1602 = vmatpush.bf16.msrb.mxu2 %v4154_v26  ;;  %1616 = vmatpush.bf16.msrb.mxu3 %v3390_v30  ;;  %v5032_v43 = vld [vmem:[#allocation5 + $0x54c] sm:$0xf0]  ;;  %v3866_v48 = vor.u32 %v5000_v40, %v3865_v39  ;;  %v3849_v51 = vld [vmem:[#allocation5 + $0x420] sm:$0xf]  ;;  %v5018_v18 = vld [vmem:[#allocation5 + $0x4e4] sm:$0xf]  ;;  %v3326_v26 = vor.u32 %v4862_v7, %v3323_v9  ;;  %v3822_v32 = vor.u32 %v4986_v15, %v3819_v17 }
  0x50   :  { %v5064_v45 = vld [vmem:[#allocation5 + $0x64c] sm:$0xf0]  ;;  %1575 = vmatpush.bf16.msrb.mxu0 %v3882_v36  ;;  %v3994_v49 = vor.u32 %v5032_v43, %v3993_v41  ;;  %v3977_v53 = vld [vmem:[#allocation5 + $0x520] sm:$0xf]  ;;  %v3947_v19 = vld [vmem:[#allocation5 + $0x4f0] sm:$0xf0] }
  0x51   :  { %1589 = vmatpush.bf16.msrb.mxu1 %v4010_v37  ;;  %v4122_v50 = vor.u32 %v5064_v45, %v4121_v44  ;;  %v4996_v52 = vld [vmem:[#allocation5 + $0x42c] sm:$0xf0]  ;;  %v4105_v56 = vld [vmem:[#allocation5 + $0x620] sm:$0xf]  ;;  %v4860_v24 = vld [vmem:[#allocation2 + $0x28] sm:$0xf0]  ;;  %v3950_v36 = vor.u32 %v5018_v18, %v3947_v19 }
  0x52   :  { %v5028_v55 = vld [vmem:[#allocation5 + $0x52c] sm:$0xf0]  ;;  %v3833_v61 = vld [vmem:[#allocation5 + $0x400] sm:$0xf]  ;;  %v3850_v62 = vor.u32 %v4996_v52, %v3849_v51  ;;  %v4861_v28 = vld [vmem:[#allocation2 + $0x30] sm:$0xf0]  ;;  %v5534_v37 = vor.u32 %v4860_v24, %v3309_v22 }
  0x53   :  { %1603 = vmatpush.bf16.msrb.mxu2 %v4138_v38  ;;  %1617 = vmatpush.bf16.msrb.mxu3 %v3374_v42  ;;  %v5060_v58 = vld [vmem:[#allocation5 + $0x62c] sm:$0xf0]  ;;  %v3961_v1 = vld [vmem:[#allocation5 + $0x500] sm:$0xf]  ;;  %v3978_v3 = vor.u32 %v5028_v55, %v3977_v53  ;;  %v4857_v29 = vld [vmem:[#allocation2 + $0x14] sm:$0xf] }
  0x54   :  { %1576 = vmatpush.bf16.msrb.mxu0 %v3866_v48  ;;  %v4992_v63 = vld [vmem:[#allocation5 + $0x40c] sm:$0xf0]  ;;  %v4106_v4 = vor.u32 %v5060_v58, %v4105_v56  ;;  %v4089_v5 = vld [vmem:[#allocation5 + $0x600] sm:$0xf]  ;;  %v3311_v30 = vld [vmem:[#allocation2 + $0x2c] sm:$0xf0] }
  0x55   :  { %v5024_v2 = vld [vmem:[#allocation5 + $0x50c] sm:$0xf0]  ;;  %1590 = vmatpush.bf16.msrb.mxu1 %v3994_v49  ;;  %v3834_v16 = vor.u32 %v4992_v63, %v3833_v61  ;;  %v3317_v25 = vld [vmem:[#allocation2 + $0x18] sm:$0xf]  ;;  %v4918_v33 = vld [vmem:[#allocation5 + $0x1c4] sm:$0xf]  ;;  %v5538_v42 = vor.u32 %v4857_v29, %v3311_v30 }
  0x56   :  { %v5056_v6 = vld [vmem:[#allocation5 + $0x60c] sm:$0xf0]  ;;  %v3962_v20 = vor.u32 %v5024_v2, %v3961_v1  ;;  %v3675_v38 = vld [vmem:[#allocation5 + $0x2d0] sm:$0xf0]  ;;  %v4982_v39 = vld [vmem:[#allocation5 + $0x3c4] sm:$0xf]  ;;  %v5536_v41 = vor.u32 %v4861_v28, %v3317_v25  ;;  %v3550_v45 = vor.u32 %v4918_v33, %v3547_v34 }
  0x57   :  { %1604 = vmatpush.bf16.msrb.mxu2 %v4122_v50  ;;  %1618 = vmatpush.bf16.msrb.mxu3 %v3358_v54  ;;  %v4090_v21 = vor.u32 %v5056_v6, %v4089_v5  ;;  %v3803_v40 = vld [vmem:[#allocation5 + $0x3d0] sm:$0xf0]  ;;  %v5014_v43 = vld [vmem:[#allocation5 + $0x4c4] sm:$0xf]  ;;  %v3678_v46 = vor.u32 %v4950_v35, %v3675_v38 }
  0x58   :  { %1577 = vmatpush.bf16.msrb.mxu0 %v3850_v62  ;;  %v3931_v44 = vld [vmem:[#allocation5 + $0x4d0] sm:$0xf0]  ;;  %v3806_v47 = vor.u32 %v4982_v39, %v3803_v40  ;;  %v4914_v48 = vld [vmem:[#allocation5 + $0x1a4] sm:$0xf] }
  0x59   :  { %1591 = vmatpush.bf16.msrb.mxu1 %v3978_v3  ;;  %v3531_v49 = vld [vmem:[#allocation5 + $0x1b0] sm:$0xf0]  ;;  %v4946_v50 = vld [vmem:[#allocation5 + $0x2a4] sm:$0xf]  ;;  %v3934_v51 = vor.u32 %v5014_v43, %v3931_v44 }
  0x5a   :  { %v3659_v52 = vld [vmem:[#allocation5 + $0x2b0] sm:$0xf0]  ;;  %v4978_v53 = vld [vmem:[#allocation5 + $0x3a4] sm:$0xf]  ;;  %v3534_v58 = vor.u32 %v4914_v48, %v3531_v49 }
  0x5b   :  { %1605 = vmatpush.bf16.msrb.mxu2 %v4106_v4  ;;  %1619 = vmatpush.bf16.msrb.mxu3 %v3342_v8  ;;  %v3787_v54 = vld [vmem:[#allocation5 + $0x3b0] sm:$0xf0]  ;;  %v5010_v55 = vld [vmem:[#allocation5 + $0x4a4] sm:$0xf]  ;;  %v3662_v59 = vor.u32 %v4946_v50, %v3659_v52 }
  0x5c   :  { %1578 = vmatpush.bf16.msrb.mxu0 %v3834_v16  ;;  %v3915_v56 = vld [vmem:[#allocation5 + $0x4b0] sm:$0xf0]  ;;  %v3790_v60 = vor.u32 %v4978_v53, %v3787_v54  ;;  %v4910_v61 = vld [vmem:[#allocation5 + $0x184] sm:$0xf] }
  0x5d   :  { %1592 = vmatpush.bf16.msrb.mxu1 %v3962_v20  ;;  %v3515_v62 = vld [vmem:[#allocation5 + $0x190] sm:$0xf0]  ;;  %v4942_v63 = vld [vmem:[#allocation5 + $0x284] sm:$0xf]  ;;  %v3918_v1 = vor.u32 %v5010_v55, %v3915_v56 }
  0x5e   :  { %v3643_v2 = vld [vmem:[#allocation5 + $0x290] sm:$0xf0]  ;;  %v4974_v3 = vld [vmem:[#allocation5 + $0x384] sm:$0xf]  ;;  %v3518_v7 = vor.u32 %v4910_v61, %v3515_v62 }
  0x5f   :  { %1606 = vmatpush.bf16.msrb.mxu2 %v4090_v21  ;;  %1620 = vmatpush.bf16.msrb.mxu3 %v3326_v26  ;;  %v3771_v4 = vld [vmem:[#allocation5 + $0x390] sm:$0xf0]  ;;  %v5006_v5 = vld [vmem:[#allocation5 + $0x484] sm:$0xf]  ;;  %v3646_v8 = vor.u32 %v4942_v63, %v3643_v2 }
  0x60   :  { %1627 = vmatpush.bf16.msra.mxu0 %v3566_v27  ;;  %1593 = vmatmul.bf16.vlgmr.msrb.gmra.mxu1 %v5538_v42  ;;  %v3899_v6 = vld [vmem:[#allocation5 + $0x490] sm:$0xf0]  ;;  %v3774_v9 = vor.u32 %v4974_v3, %v3771_v4  ;;  %v4906_v10 = vld [vmem:[#allocation5 + $0x164] sm:$0xf]  ;;  %v3441_v3 = vld [vmem:[#allocation5 + $0xe8] sm:$0xf] }
  0x61   :  { %1641 = vmatpush.bf16.msra.mxu1 %v3694_v31  ;;  %1579 = vmatmul.bf16.vlgmr.msrb.gmra.mxu0 %v5534_v37  ;;  %v3499_v12 = vld [vmem:[#allocation5 + $0x170] sm:$0xf0]  ;;  %v4938_v13 = vld [vmem:[#allocation5 + $0x264] sm:$0xf]  ;;  %v3902_v14 = vor.u32 %v5006_v5, %v3899_v6  ;;  %v4893_v4 = vld [vmem:[#allocation5 + $0xf4] sm:$0xf0] }
  0x62   :  { %1607 = vmatmul.bf16.vlgmr.msrb.gmra.mxu2 %v5536_v41  ;;  %1621 = vmatmul.bf16.vlgmr.msrb.gmra.mxu3 %v5522_v57  ;;  %v3627_v15 = vld [vmem:[#allocation5 + $0x270] sm:$0xf0]  ;;  %v4970_v16 = vld [vmem:[#allocation5 + $0x364] sm:$0xf]  ;;  %v3502_v20 = vor.u32 %v4906_v10, %v3499_v12 }
  0x63   :  { %1655 = vmatpush.bf16.msra.mxu2 %v3822_v32  ;;  %1669 = vmatpush.bf16.msra.mxu3 %v3950_v36  ;;  %v3755_v17 = vld [vmem:[#allocation5 + $0x370] sm:$0xf0]  ;;  %v5002_v18 = vld [vmem:[#allocation5 + $0x464] sm:$0xf]  ;;  %v3630_v21 = vor.u32 %v4938_v13, %v3627_v15  ;;  %v3442_v13 = vor.u32 %v4893_v4, %v3441_v3 }
  0x64   :  { %1628 = vmatpush.bf16.msra.mxu0 %v3550_v45  ;;  %v3883_v19 = vld [vmem:[#allocation5 + $0x470] sm:$0xf0]  ;;  %v3758_v22 = vor.u32 %v4970_v16, %v3755_v17  ;;  %v4902_v24 = vld [vmem:[#allocation5 + $0x144] sm:$0xf] }
  0x65   :  { %1642 = vmatpush.bf16.msra.mxu1 %v3678_v46  ;;  %v3483_v25 = vld [vmem:[#allocation5 + $0x150] sm:$0xf0]  ;;  %v4934_v26 = vld [vmem:[#allocation5 + $0x244] sm:$0xf]  ;;  %v3886_v27 = vor.u32 %v5002_v18, %v3883_v19  ;;  %v3425_v19 = vld [vmem:[#allocation5 + $0xc8] sm:$0xf] }
  0x66   :  { %v3611_v28 = vld [vmem:[#allocation5 + $0x250] sm:$0xf0]  ;;  %v4966_v29 = vld [vmem:[#allocation5 + $0x344] sm:$0xf]  ;;  %v3486_v33 = vor.u32 %v4902_v24, %v3483_v25 }
  0x67   :  { %1656 = vmatpush.bf16.msra.mxu2 %v3806_v47  ;;  %1670 = vmatpush.bf16.msra.mxu3 %v3934_v51  ;;  %v3739_v30 = vld [vmem:[#allocation5 + $0x350] sm:$0xf0]  ;;  %v4998_v31 = vld [vmem:[#allocation5 + $0x444] sm:$0xf]  ;;  %v3614_v34 = vor.u32 %v4934_v26, %v3611_v28 }
  0x68   :  { %1629 = vmatpush.bf16.msra.mxu0 %v3534_v58  ;;  %v3867_v32 = vld [vmem:[#allocation5 + $0x450] sm:$0xf0]  ;;  %v3742_v35 = vor.u32 %v4966_v29, %v3739_v30  ;;  %v4898_v36 = vld [vmem:[#allocation5 + $0x124] sm:$0xf] }
  0x69   :  { %1643 = vmatpush.bf16.msra.mxu1 %v3662_v59  ;;  %v3467_v38 = vld [vmem:[#allocation5 + $0x130] sm:$0xf0]  ;;  %v4930_v39 = vld [vmem:[#allocation5 + $0x224] sm:$0xf]  ;;  %v3870_v40 = vor.u32 %v4998_v31, %v3867_v32  ;;  %v3409_v32 = vld [vmem:[#allocation5 + $0xa8] sm:$0xf] }
  0x6a   :  { %v3595_v43 = vld [vmem:[#allocation5 + $0x230] sm:$0xf0]  ;;  %v4962_v44 = vld [vmem:[#allocation5 + $0x324] sm:$0xf]  ;;  %v3470_v48 = vor.u32 %v4898_v36, %v3467_v38 }
  0x6b   :  { %1657 = vmatpush.bf16.msra.mxu2 %v3790_v60  ;;  %1671 = vmatpush.bf16.msra.mxu3 %v3918_v1  ;;  %v3723_v45 = vld [vmem:[#allocation5 + $0x330] sm:$0xf0]  ;;  %v4994_v46 = vld [vmem:[#allocation5 + $0x424] sm:$0xf]  ;;  %v3598_v51 = vor.u32 %v4930_v39, %v3595_v43 }
  0x6c   :  { %1630 = vmatpush.bf16.msra.mxu0 %v3518_v7  ;;  %v3851_v47 = vld [vmem:[#allocation5 + $0x430] sm:$0xf0]  ;;  %v4894_v49 = vld [vmem:[#allocation5 + $0x104] sm:$0xf]  ;;  %v3726_v52 = vor.u32 %v4962_v44, %v3723_v45  ;;  %v3569_v7 = vld [vmem:[#allocation5 + $0x1e8] sm:$0xf] }
  0x6d   :  { %1644 = vmatpush.bf16.msra.mxu1 %v3646_v8  ;;  %v3451_v50 = vld [vmem:[#allocation5 + $0x110] sm:$0xf0]  ;;  %v4926_v53 = vld [vmem:[#allocation5 + $0x204] sm:$0xf]  ;;  %v3854_v56 = vor.u32 %v4994_v46, %v3851_v47  ;;  %v4925_v8 = vld [vmem:[#allocation5 + $0x1f4] sm:$0xf0] }
  0x6e   :  { %v3579_v54 = vld [vmem:[#allocation5 + $0x210] sm:$0xf0]  ;;  %v4958_v55 = vld [vmem:[#allocation5 + $0x304] sm:$0xf]  ;;  %v3454_v1 = vor.u32 %v4894_v49, %v3451_v50  ;;  %v3570_v17 = vor.u32 %v4925_v8, %v3569_v7  ;;  %v3393_v47 = vld [vmem:[#allocation5 + $0x88] sm:$0xf] }
  0x6f   :  { %1658 = vmatpush.bf16.msra.mxu2 %v3774_v9  ;;  %1672 = vmatpush.bf16.msra.mxu3 %v3902_v14  ;;  %v3707_v58 = vld [vmem:[#allocation5 + $0x310] sm:$0xf0]  ;;  %v4990_v59 = vld [vmem:[#allocation5 + $0x404] sm:$0xf]  ;;  %v3582_v5 = vor.u32 %v4926_v53, %v3579_v54  ;;  %v3521_v49 = vld [vmem:[#allocation5 + $0x188] sm:$0xf] }
  0x70   :  { %1631 = vmatpush.bf16.msra.mxu0 %v3502_v20  ;;  %v3835_v60 = vld [vmem:[#allocation5 + $0x410] sm:$0xf0]  ;;  %v5050_v61 = vld [vmem:[#allocation5 + $0x5e4] sm:$0xf]  ;;  %v3710_v6 = vor.u32 %v4958_v55, %v3707_v58  ;;  %v4889_v20 = vld [vmem:[#allocation5 + $0xd4] sm:$0xf0] }
  0x71   :  { %1645 = vmatpush.bf16.msra.mxu1 %v3630_v21  ;;  %v4075_v62 = vld [vmem:[#allocation5 + $0x5f0] sm:$0xf0]  ;;  %v5082_v63 = vld [vmem:[#allocation5 + $0x6e4] sm:$0xf]  ;;  %v3838_v9 = vor.u32 %v4990_v59, %v3835_v60  ;;  %v3553_v21 = vld [vmem:[#allocation5 + $0x1c8] sm:$0xf]  ;;  %v3426_v26 = vor.u32 %v4889_v20, %v3425_v19 }
  0x72   :  { %v4203_v2 = vld [vmem:[#allocation5 + $0x6f0] sm:$0xf0]  ;;  %v4078_v10 = vor.u32 %v5050_v61, %v4075_v62  ;;  %v5046_v14 = vld [vmem:[#allocation5 + $0x5c4] sm:$0xf]  ;;  %v4913_v50 = vld [vmem:[#allocation5 + $0x194] sm:$0xf0] }
  0x73   :  { %1659 = vmatpush.bf16.msra.mxu2 %v3758_v22  ;;  %1673 = vmatpush.bf16.msra.mxu3 %v3886_v27  ;;  %v4206_v12 = vor.u32 %v5082_v63, %v4203_v2  ;;  %v4059_v15 = vld [vmem:[#allocation5 + $0x5d0] sm:$0xf0]  ;;  %v5078_v16 = vld [vmem:[#allocation5 + $0x6c4] sm:$0xf]  ;;  %v4921_v22 = vld [vmem:[#allocation5 + $0x1d4] sm:$0xf0]  ;;  %v3522_v58 = vor.u32 %v4913_v50, %v3521_v49 }
  0x74   :  { %1632 = vmatpush.bf16.msra.mxu0 %v3486_v33  ;;  %v4187_v18 = vld [vmem:[#allocation5 + $0x6d0] sm:$0xf0]  ;;  %v4062_v24 = vor.u32 %v5046_v14, %v4059_v15  ;;  %v5042_v27 = vld [vmem:[#allocation5 + $0x5a4] sm:$0xf]  ;;  %v3554_v30 = vor.u32 %v4921_v22, %v3553_v21  ;;  %v4885_v33 = vld [vmem:[#allocation5 + $0xb4] sm:$0xf0] }
  0x75   :  { %1646 = vmatpush.bf16.msra.mxu1 %v3614_v34  ;;  %v4190_v25 = vor.u32 %v5078_v16, %v4187_v18  ;;  %v4043_v28 = vld [vmem:[#allocation5 + $0x5b0] sm:$0xf0]  ;;  %v5074_v29 = vld [vmem:[#allocation5 + $0x6a4] sm:$0xf]  ;;  %v3537_v34 = vld [vmem:[#allocation5 + $0x1a8] sm:$0xf]  ;;  %v3410_v39 = vor.u32 %v4885_v33, %v3409_v32 }
  0x76   :  { %v4171_v31 = vld [vmem:[#allocation5 + $0x6b0] sm:$0xf0]  ;;  %v4046_v36 = vor.u32 %v5042_v27, %v4043_v28  ;;  %v5070_v44 = vld [vmem:[#allocation5 + $0x684] sm:$0xf]  ;;  %v3377_v60 = vld [vmem:[#allocation5 + $0x68] sm:$0xf] }
  0x77   :  { %1660 = vmatpush.bf16.msra.mxu2 %v3742_v35  ;;  %1674 = vmatpush.bf16.msra.mxu3 %v3870_v40  ;;  %v4917_v35 = vld [vmem:[#allocation5 + $0x1b4] sm:$0xf0]  ;;  %v4174_v38 = vor.u32 %v5074_v29, %v4171_v31  ;;  %v5038_v40 = vld [vmem:[#allocation5 + $0x584] sm:$0xf]  ;;  %v4027_v43 = vld [vmem:[#allocation5 + $0x590] sm:$0xf0] }
  0x78   :  { %1633 = vmatpush.bf16.msra.mxu0 %v3470_v48  ;;  %v3538_v45 = vor.u32 %v4917_v35, %v3537_v34  ;;  %v4155_v46 = vld [vmem:[#allocation5 + $0x690] sm:$0xf0]  ;;  %v4881_v48 = vld [vmem:[#allocation5 + $0x94] sm:$0xf0]  ;;  %v5034_v54 = vld [vmem:[#allocation5 + $0x564] sm:$0xf] }
  0x79   :  { %1647 = vmatpush.bf16.msra.mxu1 %v3598_v51  ;;  %v4030_v51 = vor.u32 %v5038_v40, %v4027_v43  ;;  %v3394_v53 = vor.u32 %v4881_v48, %v3393_v47  ;;  %v4011_v55 = vld [vmem:[#allocation5 + $0x570] sm:$0xf0]  ;;  %v4877_v61 = vld [vmem:[#allocation5 + $0x74] sm:$0xf0]  ;;  %v3505_v62 = vld [vmem:[#allocation5 + $0x168] sm:$0xf] }
  0x7a   :  { %v4139_v59 = vld [vmem:[#allocation5 + $0x670] sm:$0xf0]  ;;  %v4909_v63 = vld [vmem:[#allocation5 + $0x174] sm:$0xf0]  ;;  %v3378_v3 = vor.u32 %v4877_v61, %v3377_v60  ;;  %v5030_v4 = vld [vmem:[#allocation5 + $0x544] sm:$0xf] }
  0x7b   :  { %1661 = vmatpush.bf16.msra.mxu2 %v3726_v52  ;;  %1675 = vmatpush.bf16.msra.mxu3 %v3854_v56  ;;  %v4158_v52 = vor.u32 %v5070_v44, %v4155_v46  ;;  %v5066_v56 = vld [vmem:[#allocation5 + $0x664] sm:$0xf]  ;;  %v3506_v7 = vor.u32 %v4909_v63, %v3505_v62  ;;  %v4123_v8 = vld [vmem:[#allocation5 + $0x650] sm:$0xf0]  ;;  %v3345_v22 = vld [vmem:[#allocation5 + $0x28] sm:$0xf] }
  0x7c   :  { %1634 = vmatpush.bf16.msra.mxu0 %v3454_v1  ;;  %v4014_v1 = vor.u32 %v5034_v54, %v4011_v55  ;;  %v4142_v2 = vor.u32 %v5066_v56, %v4139_v59  ;;  %v3979_v18 = vld [vmem:[#allocation5 + $0x530] sm:$0xf0]  ;;  %v5058_v19 = vld [vmem:[#allocation5 + $0x624] sm:$0xf]  ;;  %v3329_v34 = vld [vmem:[#allocation5 + $0x8] sm:$0xf] }
  0x7d   :  { %1648 = vmatpush.bf16.msra.mxu1 %v3582_v5  ;;  %v3995_v5 = vld [vmem:[#allocation5 + $0x550] sm:$0xf0]  ;;  %v5022_v28 = vld [vmem:[#allocation5 + $0x504] sm:$0xf]  ;;  %v3697_v40 = vld [vmem:[#allocation5 + $0x2e8] sm:$0xf] }
  0x7e   :  { %v3998_v14 = vor.u32 %v5030_v4, %v3995_v5  ;;  %v4107_v21 = vld [vmem:[#allocation5 + $0x630] sm:$0xf0]  ;;  %v5054_v32 = vld [vmem:[#allocation5 + $0x604] sm:$0xf]  ;;  %v4957_v43 = vld [vmem:[#allocation5 + $0x2f4] sm:$0xf0] }
  0x7f   :  { %1662 = vmatpush.bf16.msra.mxu2 %v3710_v6  ;;  %1676 = vmatpush.bf16.msra.mxu3 %v3838_v9  ;;  %v5062_v6 = vld [vmem:[#allocation5 + $0x644] sm:$0xf]  ;;  %v3361_v9 = vld [vmem:[#allocation5 + $0x48] sm:$0xf]  ;;  %v3963_v29 = vld [vmem:[#allocation5 + $0x510] sm:$0xf0]  ;;  %v3698_v54 = vor.u32 %v4957_v43, %v3697_v40 }
  0x80   :  { %1683 = vmatpush.bf16.msrb.mxu0 %v4078_v10  ;;  %1649 = vmatmul.bf16.vlgmr.msra.gmra.mxu1 %v5524_v0  ;;  %v4873_v10 = vld [vmem:[#allocation5 + $0x54] sm:$0xf0]  ;;  %v4126_v15 = vor.u32 %v5062_v6, %v4123_v8  ;;  %v4091_v33 = vld [vmem:[#allocation5 + $0x610] sm:$0xf0]  ;;  %v3825_v44 = vld [vmem:[#allocation5 + $0x3e8] sm:$0xf] }
  0x81   :  { %1697 = vmatpush.bf16.msrb.mxu1 %v4206_v12  ;;  %1635 = vmatmul.bf16.vlgmr.msra.gmra.mxu0 %v5528_v11  ;;  %v3489_v12 = vld [vmem:[#allocation5 + $0x148] sm:$0xf]  ;;  %v3362_v16 = vor.u32 %v4873_v10, %v3361_v9  ;;  %v4989_v46 = vld [vmem:[#allocation5 + $0x3f4] sm:$0xf0]  ;;  %v4094_v49 = vor.u32 %v5054_v32, %v4091_v33 }
  0x82   :  { %1663 = vmatmul.bf16.vlgmr.msra.gmra.mxu2 %v5531_v23  ;;  %1677 = vmatmul.bf16.vlgmr.msra.gmra.mxu3 %v5534_v37  ;;  %v3953_v47 = vld [vmem:[#allocation5 + $0x4e8] sm:$0xf]  ;;  %v5021_v48 = vld [vmem:[#allocation5 + $0x4f4] sm:$0xf0]  ;;  %v3826_v55 = vor.u32 %v4989_v46, %v3825_v44 }
  0x83   :  { %1711 = vmatpush.bf16.msrb.mxu2 %v3442_v13  ;;  %1725 = vmatpush.bf16.msrb.mxu3 %v3570_v17  ;;  %v4905_v13 = vld [vmem:[#allocation5 + $0x154] sm:$0xf0]  ;;  %v5026_v17 = vld [vmem:[#allocation5 + $0x524] sm:$0xf]  ;;  %v3954_v56 = vor.u32 %v5021_v48, %v3953_v47  ;;  %v3809_v60 = vld [vmem:[#allocation5 + $0x3c8] sm:$0xf] }
  0x84   :  { %1684 = vmatpush.bf16.msrb.mxu0 %v4062_v24  ;;  %v3490_v20 = vor.u32 %v4905_v13, %v3489_v12  ;;  %v4869_v24 = vld [vmem:[#allocation5 + $0x34] sm:$0xf0]  ;;  %v3982_v27 = vor.u32 %v5026_v17, %v3979_v18  ;;  %v3937_v63 = vld [vmem:[#allocation5 + $0x4c8] sm:$0xf] }
  0x85   :  { %1698 = vmatpush.bf16.msrb.mxu1 %v4190_v25  ;;  %v3473_v25 = vld [vmem:[#allocation5 + $0x128] sm:$0xf]  ;;  %v3346_v31 = vor.u32 %v4869_v24, %v3345_v22  ;;  %v4953_v59 = vld [vmem:[#allocation5 + $0x2d4] sm:$0xf0] }
  0x86   :  { %v4985_v62 = vld [vmem:[#allocation5 + $0x3d4] sm:$0xf0]  ;;  %v3793_v9 = vld [vmem:[#allocation5 + $0x3a8] sm:$0xf] }
  0x87   :  { %1712 = vmatpush.bf16.msrb.mxu2 %v3426_v26  ;;  %1726 = vmatpush.bf16.msrb.mxu3 %v3554_v30  ;;  %v4901_v26 = vld [vmem:[#allocation5 + $0x134] sm:$0xf0]  ;;  %v4110_v30 = vor.u32 %v5058_v19, %v4107_v21  ;;  %v3810_v5 = vor.u32 %v4985_v62, %v3809_v60  ;;  %v3921_v13 = vld [vmem:[#allocation5 + $0x4a8] sm:$0xf] }
  0x88   :  { %1685 = vmatpush.bf16.msrb.mxu0 %v4046_v36  ;;  %v3474_v35 = vor.u32 %v4901_v26, %v3473_v25  ;;  %v4865_v36 = vld [vmem:[#allocation5 + $0x14] sm:$0xf0]  ;;  %v3777_v22 = vld [vmem:[#allocation5 + $0x388] sm:$0xf] }
  0x89   :  { %1699 = vmatpush.bf16.msrb.mxu1 %v4174_v38  ;;  %v3457_v38 = vld [vmem:[#allocation5 + $0x108] sm:$0xf]  ;;  %v3330_v50 = vor.u32 %v4865_v36, %v3329_v34  ;;  %v4949_v8 = vld [vmem:[#allocation5 + $0x2b4] sm:$0xf0] }
  0x8a   :  { %v4981_v12 = vld [vmem:[#allocation5 + $0x3b4] sm:$0xf0]  ;;  %v3905_v26 = vld [vmem:[#allocation5 + $0x488] sm:$0xf] }
  0x8b   :  { %1713 = vmatpush.bf16.msrb.mxu2 %v3410_v39  ;;  %1727 = vmatpush.bf16.msrb.mxu3 %v3538_v45  ;;  %v4897_v39 = vld [vmem:[#allocation5 + $0x114] sm:$0xf0]  ;;  %v3966_v45 = vor.u32 %v5022_v28, %v3963_v29  ;;  %v3794_v18 = vor.u32 %v4981_v12, %v3793_v9  ;;  %v4033_v28 = vld [vmem:[#allocation5 + $0x588] sm:$0xf] }
  0x8c   :  { %1686 = vmatpush.bf16.msrb.mxu0 %v4030_v51  ;;  %v4081_v51 = vld [vmem:[#allocation5 + $0x5e8] sm:$0xf]  ;;  %v4945_v21 = vld [vmem:[#allocation5 + $0x294] sm:$0xf0] }
  0x8d   :  { %1700 = vmatpush.bf16.msrb.mxu1 %v4158_v52  ;;  %v5053_v52 = vld [vmem:[#allocation5 + $0x5f4] sm:$0xf0]  ;;  %v3633_v33 = vld [vmem:[#allocation5 + $0x268] sm:$0xf] }
  0x8e   :  { %v4082_v61 = vor.u32 %v5053_v52, %v4081_v51  ;;  %v4977_v25 = vld [vmem:[#allocation5 + $0x394] sm:$0xf0]  ;;  %v4017_v43 = vld [vmem:[#allocation5 + $0x568] sm:$0xf] }
  0x8f   :  { %1714 = vmatpush.bf16.msrb.mxu2 %v3394_v53  ;;  %1728 = vmatpush.bf16.msrb.mxu3 %v3522_v58  ;;  %v3458_v53 = vor.u32 %v4897_v39, %v3457_v38  ;;  %v3681_v58 = vld [vmem:[#allocation5 + $0x2c8] sm:$0xf]  ;;  %v5041_v29 = vld [vmem:[#allocation5 + $0x594] sm:$0xf0] }
  0x90   :  { %1687 = vmatpush.bf16.msrb.mxu0 %v4014_v1  ;;  %v5017_v1 = vld [vmem:[#allocation5 + $0x4d4] sm:$0xf0]  ;;  %v3682_v4 = vor.u32 %v4953_v59, %v3681_v58  ;;  %v4034_v36 = vor.u32 %v5041_v29, %v4033_v28  ;;  %v3889_v39 = vld [vmem:[#allocation5 + $0x468] sm:$0xf] }
  0x91   :  { %1701 = vmatpush.bf16.msrb.mxu1 %v4142_v2  ;;  %v4065_v2 = vld [vmem:[#allocation5 + $0x5c8] sm:$0xf]  ;;  %v3938_v6 = vor.u32 %v5017_v1, %v3937_v63  ;;  %v4941_v34 = vld [vmem:[#allocation5 + $0x274] sm:$0xf0] }
  0x92   :  { %v4973_v38 = vld [vmem:[#allocation5 + $0x374] sm:$0xf0]  ;;  %v3617_v48 = vld [vmem:[#allocation5 + $0x248] sm:$0xf] }
  0x93   :  { %1715 = vmatpush.bf16.msrb.mxu2 %v3378_v3  ;;  %1729 = vmatpush.bf16.msrb.mxu3 %v3506_v7  ;;  %v5049_v3 = vld [vmem:[#allocation5 + $0x5d4] sm:$0xf0]  ;;  %v3665_v7 = vld [vmem:[#allocation5 + $0x2a8] sm:$0xf] }
  0x94   :  { %1688 = vmatpush.bf16.msrb.mxu0 %v3998_v14  ;;  %v4066_v10 = vor.u32 %v5049_v3, %v4065_v2  ;;  %v5013_v14 = vld [vmem:[#allocation5 + $0x4b4] sm:$0xf0]  ;;  %v3666_v17 = vor.u32 %v4949_v8, %v3665_v7  ;;  %v3729_v63 = vld [vmem:[#allocation5 + $0x328] sm:$0xf] }
  0x95   :  { %1702 = vmatpush.bf16.msrb.mxu1 %v4126_v15  ;;  %v4049_v15 = vld [vmem:[#allocation5 + $0x5a8] sm:$0xf]  ;;  %v3922_v19 = vor.u32 %v5013_v14, %v3921_v13  ;;  %v5005_v40 = vld [vmem:[#allocation5 + $0x474] sm:$0xf0] }
  0x96   :  { %v5037_v44 = vld [vmem:[#allocation5 + $0x574] sm:$0xf0]  ;;  %v3890_v47 = vor.u32 %v5005_v40, %v3889_v39  ;;  %v3857_v3 = vld [vmem:[#allocation5 + $0x428] sm:$0xf]  ;;  %v4887_v39 = vld [vmem:[#allocation5 + $0xcc] sm:$0xf] }
  0x97   :  { %1716 = vmatpush.bf16.msrb.mxu2 %v3362_v16  ;;  %1730 = vmatpush.bf16.msrb.mxu3 %v3490_v20  ;;  %v5045_v16 = vld [vmem:[#allocation5 + $0x5b4] sm:$0xf0]  ;;  %v3649_v20 = vld [vmem:[#allocation5 + $0x288] sm:$0xf]  ;;  %v4018_v51 = vor.u32 %v5037_v44, %v4017_v43  ;;  %v3427_v43 = vld [vmem:[#allocation5 + $0xd8] sm:$0xf0] }
  0x98   :  { %1689 = vmatpush.bf16.msrb.mxu0 %v3982_v27  ;;  %v4050_v24 = vor.u32 %v5045_v16, %v4049_v15  ;;  %v5009_v27 = vld [vmem:[#allocation5 + $0x494] sm:$0xf0]  ;;  %v3585_v8 = vld [vmem:[#allocation5 + $0x208] sm:$0xf]  ;;  %v4919_v44 = vld [vmem:[#allocation5 + $0x1cc] sm:$0xf] }
  0x99   :  { %1703 = vmatpush.bf16.msrb.mxu1 %v4110_v30  ;;  %v3650_v30 = vor.u32 %v4945_v21, %v3649_v20  ;;  %v3906_v32 = vor.u32 %v5009_v27, %v3905_v26  ;;  %v4969_v52 = vld [vmem:[#allocation5 + $0x354] sm:$0xf0]  ;;  %v3713_v13 = vld [vmem:[#allocation5 + $0x308] sm:$0xf]  ;;  %v4923_v26 = vld [vmem:[#allocation5 + $0x1ec] sm:$0xf] }
  0x9a   :  { %v4933_v62 = vld [vmem:[#allocation5 + $0x234] sm:$0xf0]  ;;  %v3841_v15 = vld [vmem:[#allocation5 + $0x408] sm:$0xf]  ;;  %v3571_v27 = vld [vmem:[#allocation5 + $0x1f8] sm:$0xf0] }
  0x9b   :  { %1717 = vmatpush.bf16.msrb.mxu2 %v3346_v31  ;;  %1731 = vmatpush.bf16.msrb.mxu3 %v3474_v35  ;;  %v3778_v31 = vor.u32 %v4977_v25, %v3777_v22  ;;  %v3761_v35 = vld [vmem:[#allocation5 + $0x368] sm:$0xf]  ;;  %v4965_v2 = vld [vmem:[#allocation5 + $0x334] sm:$0xf0]  ;;  %v4891_v22 = vld [vmem:[#allocation5 + $0xec] sm:$0xf] }
  0x9c   :  { %1690 = vmatpush.bf16.msrb.mxu0 %v3966_v45  ;;  %v3634_v45 = vor.u32 %v4941_v34, %v3633_v33  ;;  %v3762_v46 = vor.u32 %v4973_v38, %v3761_v35  ;;  %v4929_v9 = vld [vmem:[#allocation5 + $0x214] sm:$0xf0]  ;;  %v4209_v20 = vld [vmem:[#allocation5 + $0x6e8] sm:$0xf]  ;;  %v3443_v25 = vld [vmem:[#allocation5 + $0xf8] sm:$0xf0]  ;;  %v3574_v35 = vor.u32 %v4923_v26, %v3571_v27 }
  0x9d   :  { %1704 = vmatpush.bf16.msrb.mxu1 %v4094_v49  ;;  %v4937_v49 = vld [vmem:[#allocation5 + $0x254] sm:$0xf0]  ;;  %v3446_v34 = vor.u32 %v4891_v22, %v3443_v25  ;;  %v3635_v22 = vld [vmem:[#allocation5 + $0x278] sm:$0xf0]  ;;  %v4129_v27 = vld [vmem:[#allocation5 + $0x648] sm:$0xf] }
  0x9e   :  { %v3618_v58 = vor.u32 %v4937_v49, %v3617_v48  ;;  %v4961_v14 = vld [vmem:[#allocation5 + $0x314] sm:$0xf0]  ;;  %v3430_v49 = vor.u32 %v4887_v39, %v3427_v43 }
  0x9f   :  { %1718 = vmatpush.bf16.msrb.mxu2 %v3330_v50  ;;  %1732 = vmatpush.bf16.msrb.mxu3 %v3458_v53  ;;  %v3745_v50 = vld [vmem:[#allocation5 + $0x348] sm:$0xf]  ;;  %v5085_v21 = vld [vmem:[#allocation5 + $0x6f4] sm:$0xf0]  ;;  %v3714_v28 = vor.u32 %v4961_v14, %v3713_v13 }
  0xa0   :  { %1739 = vmatpush.bf16.msra.mxu0 %v3698_v54  ;;  %1705 = vmatmul.bf16.vlgmr.msrb.gmra.mxu1 %v5536_v41  ;;  %v3873_v53 = vld [vmem:[#allocation5 + $0x448] sm:$0xf]  ;;  %v5001_v54 = vld [vmem:[#allocation5 + $0x454] sm:$0xf0]  ;;  %v3746_v59 = vor.u32 %v4969_v52, %v3745_v50  ;;  %v4210_v33 = vor.u32 %v5085_v21, %v4209_v20  ;;  %v3507_v20 = vld [vmem:[#allocation5 + $0x178] sm:$0xf0] }
  0xa1   :  { %1753 = vmatpush.bf16.msra.mxu1 %v3826_v55  ;;  %1691 = vmatmul.bf16.vlgmr.msrb.gmra.mxu0 %v5538_v42  ;;  %v4001_v55 = vld [vmem:[#allocation5 + $0x548] sm:$0xf]  ;;  %v3874_v60 = vor.u32 %v5001_v54, %v3873_v53  ;;  %v5081_v38 = vld [vmem:[#allocation5 + $0x6d4] sm:$0xf0]  ;;  %v4883_v53 = vld [vmem:[#allocation5 + $0xac] sm:$0xf] }
  0xa2   :  { %1719 = vmatmul.bf16.vlgmr.msrb.gmra.mxu2 %v5522_v57  ;;  %1733 = vmatmul.bf16.vlgmr.msrb.gmra.mxu3 %v5528_v11  ;;  %v5077_v52 = vld [vmem:[#allocation5 + $0x6b4] sm:$0xf0]  ;;  %v4145_v14 = vld [vmem:[#allocation5 + $0x668] sm:$0xf]  ;;  %v4939_v21 = vld [vmem:[#allocation5 + $0x26c] sm:$0xf] }
  0xa3   :  { %1767 = vmatpush.bf16.msra.mxu2 %v3954_v56  ;;  %1781 = vmatpush.bf16.msra.mxu3 %v4082_v61  ;;  %v5033_v56 = vld [vmem:[#allocation5 + $0x554] sm:$0xf0]  ;;  %v3601_v61 = vld [vmem:[#allocation5 + $0x228] sm:$0xf] }
  0xa4   :  { %1740 = vmatpush.bf16.msra.mxu0 %v3682_v4  ;;  %v4002_v1 = vor.u32 %v5033_v56, %v4001_v55  ;;  %v4997_v4 = vld [vmem:[#allocation5 + $0x434] sm:$0xf0]  ;;  %v3602_v7 = vor.u32 %v4933_v62, %v3601_v61  ;;  %v3411_v55 = vld [vmem:[#allocation5 + $0xb8] sm:$0xf0]  ;;  %v4915_v56 = vld [vmem:[#allocation5 + $0x1ac] sm:$0xf] }
  0xa5   :  { %1754 = vmatpush.bf16.msra.mxu1 %v3810_v5  ;;  %v3985_v5 = vld [vmem:[#allocation5 + $0x528] sm:$0xf]  ;;  %v3858_v12 = vor.u32 %v4997_v4, %v3857_v3  ;;  %v3414_v62 = vor.u32 %v4883_v53, %v3411_v55  ;;  %v4879_v3 = vld [vmem:[#allocation5 + $0x8c] sm:$0xf]  ;;  %v5061_v43 = vld [vmem:[#allocation5 + $0x634] sm:$0xf0] }
  0xa6   :  { %v5057_v53 = vld [vmem:[#allocation5 + $0x614] sm:$0xf0] }
  0xa7   :  { %1768 = vmatpush.bf16.msra.mxu2 %v3938_v6  ;;  %1782 = vmatpush.bf16.msra.mxu3 %v4066_v10  ;;  %v5029_v6 = vld [vmem:[#allocation5 + $0x534] sm:$0xf0]  ;;  %v3730_v10 = vor.u32 %v4965_v2, %v3729_v63 }
  0xa8   :  { %1741 = vmatpush.bf16.msra.mxu0 %v3666_v17  ;;  %v3986_v16 = vor.u32 %v5029_v6, %v3985_v5  ;;  %v4993_v17 = vld [vmem:[#allocation5 + $0x414] sm:$0xf0]  ;;  %v3395_v5 = vld [vmem:[#allocation5 + $0x98] sm:$0xf0]  ;;  %v4911_v6 = vld [vmem:[#allocation5 + $0x18c] sm:$0xf] }
  0xa9   :  { %1755 = vmatpush.bf16.msra.mxu1 %v3794_v18  ;;  %v3969_v18 = vld [vmem:[#allocation5 + $0x508] sm:$0xf]  ;;  %v3842_v29 = vor.u32 %v4993_v17, %v3841_v15  ;;  %v5073_v2 = vld [vmem:[#allocation5 + $0x694] sm:$0xf0] }
  0xaa   :  { %v5069_v15 = vld [vmem:[#allocation5 + $0x674] sm:$0xf0] }
  0xab   :  { %1769 = vmatpush.bf16.msra.mxu2 %v3922_v19  ;;  %1783 = vmatpush.bf16.msra.mxu3 %v4050_v24  ;;  %v5025_v19 = vld [vmem:[#allocation5 + $0x514] sm:$0xf0]  ;;  %v3586_v24 = vor.u32 %v4929_v9, %v3585_v8  ;;  %v4943_v8 = vld [vmem:[#allocation5 + $0x28c] sm:$0xf]  ;;  %v3651_v9 = vld [vmem:[#allocation5 + $0x298] sm:$0xf0] }
  0xac   :  { %1742 = vmatpush.bf16.msra.mxu0 %v3650_v30  ;;  %v4955_v30 = vld [vmem:[#allocation5 + $0x2ec] sm:$0xf]  ;;  %v3654_v17 = vor.u32 %v4943_v8, %v3651_v9 }
  0xad   :  { %1756 = vmatpush.bf16.msra.mxu1 %v3778_v31  ;;  %v3699_v31 = vld [vmem:[#allocation5 + $0x2f8] sm:$0xf0] }
  0xae   :  { %v3702_v40 = vor.u32 %v4955_v30, %v3699_v31  ;;  %v3638_v30 = vor.u32 %v4939_v21, %v3635_v22  ;;  %v3363_v31 = vld [vmem:[#allocation5 + $0x58] sm:$0xf0]  ;;  %v5047_v22 = vld [vmem:[#allocation5 + $0x5cc] sm:$0xf] }
  0xaf   :  { %1770 = vmatpush.bf16.msra.mxu2 %v3906_v32  ;;  %1784 = vmatpush.bf16.msra.mxu3 %v4034_v36  ;;  %v3970_v32 = vor.u32 %v5025_v19, %v3969_v18  ;;  %v4193_v36 = vld [vmem:[#allocation5 + $0x6c8] sm:$0xf]  ;;  %v3379_v18 = vld [vmem:[#allocation5 + $0x78] sm:$0xf0]  ;;  %v4907_v19 = vld [vmem:[#allocation5 + $0x16c] sm:$0xf] }
  0xb0   :  { %1743 = vmatpush.bf16.msra.mxu0 %v3634_v45  ;;  %v3555_v45 = vld [vmem:[#allocation5 + $0x1d8] sm:$0xf0]  ;;  %v4194_v48 = vor.u32 %v5081_v38, %v4193_v36  ;;  %v3510_v26 = vor.u32 %v4907_v19, %v3507_v20  ;;  %v5015_v19 = vld [vmem:[#allocation5 + $0x4cc] sm:$0xf] }
  0xb1   :  { %1757 = vmatpush.bf16.msra.mxu1 %v3762_v46  ;;  %v4951_v46 = vld [vmem:[#allocation5 + $0x2cc] sm:$0xf]  ;;  %v3558_v50 = vor.u32 %v4919_v44, %v3555_v45  ;;  %v3939_v21 = vld [vmem:[#allocation5 + $0x4d8] sm:$0xf0] }
  0xb2   :  { %v4867_v44 = vld [vmem:[#allocation5 + $0x2c] sm:$0xf] }
  0xb3   :  { %1771 = vmatpush.bf16.msra.mxu2 %v3890_v47  ;;  %1785 = vmatpush.bf16.msra.mxu3 %v4018_v51  ;;  %v3683_v47 = vld [vmem:[#allocation5 + $0x2d8] sm:$0xf0]  ;;  %v4177_v51 = vld [vmem:[#allocation5 + $0x6a8] sm:$0xf] }
  0xb4   :  { %1744 = vmatpush.bf16.msra.mxu0 %v3618_v58  ;;  %v3686_v54 = vor.u32 %v4951_v46, %v3683_v47  ;;  %v3539_v58 = vld [vmem:[#allocation5 + $0x1b8] sm:$0xf0]  ;;  %v4178_v61 = vor.u32 %v5077_v52, %v4177_v51  ;;  %v4899_v47 = vld [vmem:[#allocation5 + $0x12c] sm:$0xf]  ;;  %v4097_v52 = vld [vmem:[#allocation5 + $0x608] sm:$0xf] }
  0xb5   :  { %1758 = vmatpush.bf16.msra.mxu1 %v3746_v59  ;;  %v4947_v59 = vld [vmem:[#allocation5 + $0x2ac] sm:$0xf]  ;;  %v3542_v63 = vor.u32 %v4915_v56, %v3539_v58  ;;  %v3347_v46 = vld [vmem:[#allocation5 + $0x38] sm:$0xf0] }
  0xb6   :  { %v4863_v56 = vld [vmem:[#allocation5 + $0xc] sm:$0xf]  ;;  %v3331_v58 = vld [vmem:[#allocation5 + $0x18] sm:$0xf0] }
  0xb7   :  { %1772 = vmatpush.bf16.msra.mxu2 %v3874_v60  ;;  %1786 = vmatpush.bf16.msra.mxu3 %v4002_v1  ;;  %v3667_v60 = vld [vmem:[#allocation5 + $0x2b8] sm:$0xf0]  ;;  %v4161_v1 = vld [vmem:[#allocation5 + $0x688] sm:$0xf]  ;;  %v3334_v8 = vor.u32 %v4863_v56, %v3331_v58  ;;  %v5003_v56 = vld [vmem:[#allocation5 + $0x46c] sm:$0xf] }
  0xb8   :  { %1745 = vmatpush.bf16.msra.mxu0 %v3602_v7  ;;  %v3670_v4 = vor.u32 %v4947_v59, %v3667_v60  ;;  %v3523_v7 = vld [vmem:[#allocation5 + $0x198] sm:$0xf0]  ;;  %v4895_v59 = vld [vmem:[#allocation5 + $0x10c] sm:$0xf] }
  0xb9   :  { %1759 = vmatpush.bf16.msra.mxu1 %v3730_v10  ;;  %v4162_v10 = vor.u32 %v5073_v2, %v4161_v1  ;;  %v3526_v13 = vor.u32 %v4911_v6, %v3523_v7  ;;  %v4987_v1 = vld [vmem:[#allocation5 + $0x3ec] sm:$0xf]  ;;  %v3827_v2 = vld [vmem:[#allocation5 + $0x3f8] sm:$0xf0] }
  0xba   :  { %v5051_v6 = vld [vmem:[#allocation5 + $0x5ec] sm:$0xf]  ;;  %v4083_v7 = vld [vmem:[#allocation5 + $0x5f8] sm:$0xf0] }
  0xbb   :  { %1773 = vmatpush.bf16.msra.mxu2 %v3858_v12  ;;  %1787 = vmatpush.bf16.msra.mxu3 %v3986_v16  ;;  %v3398_v12 = vor.u32 %v4879_v3, %v3395_v5  ;;  %v4875_v16 = vld [vmem:[#allocation5 + $0x6c] sm:$0xf]  ;;  %v3955_v5 = vld [vmem:[#allocation5 + $0x4f8] sm:$0xf0] }
  0xbc   :  { %1746 = vmatpush.bf16.msra.mxu0 %v3586_v24  ;;  %v4146_v24 = vor.u32 %v5069_v15, %v4145_v14  ;;  %v3382_v25 = vor.u32 %v4875_v16, %v3379_v18  ;;  %v5019_v3 = vld [vmem:[#allocation5 + $0x4ec] sm:$0xf]  ;;  %v3830_v14 = vor.u32 %v4987_v1, %v3827_v2  ;;  %v4086_v16 = vor.u32 %v5051_v6, %v4083_v7  ;;  %v3811_v18 = vld [vmem:[#allocation5 + $0x3d8] sm:$0xf0] }
  0xbd   :  { %1760 = vmatpush.bf16.msra.mxu1 %v3714_v28  ;;  %v5065_v28 = vld [vmem:[#allocation5 + $0x654] sm:$0xf0]  ;;  %v3958_v15 = vor.u32 %v5019_v3, %v3955_v5  ;;  %v4147_v1 = vld [vmem:[#allocation5 + $0x678] sm:$0xf0]  ;;  %v5562_v2 = vpop.f32.mrf.mxu1  ;;  %v4967_v6 = vld [vmem:[#allocation5 + $0x34c] sm:$0xf] }
  0xbe   :  { %v4130_v36 = vor.u32 %v5065_v28, %v4129_v27  ;;  %v3942_v28 = vor.u32 %v5015_v19, %v3939_v21  ;;  %v3747_v7 = vld [vmem:[#allocation5 + $0x358] sm:$0xf0]  ;;  %v4963_v19 = vld [vmem:[#allocation5 + $0x32c] sm:$0xf] }
  0xbf   :  { %1774 = vmatpush.bf16.msra.mxu2 %v3842_v29  ;;  %1788 = vmatpush.bf16.msra.mxu3 %v3970_v32  ;;  %v4871_v29 = vld [vmem:[#allocation5 + $0x4c] sm:$0xf] }
  0xc0   :  { %1795 = vmatpush.bf16.msrb.mxu0 %v4210_v33  ;;  %1761 = vmatmul.bf16.vlgmr.msra.gmra.mxu1 %v5531_v23  ;;  %v4903_v32 = vld [vmem:[#allocation5 + $0x14c] sm:$0xf]  ;;  %v3491_v33 = vld [vmem:[#allocation5 + $0x158] sm:$0xf0]  ;;  %v3366_v38 = vor.u32 %v4871_v29, %v3363_v31 }
  0xc1   :  { %1809 = vmatpush.bf16.msrb.mxu1 %v3446_v34  ;;  %1747 = vmatmul.bf16.vlgmr.msra.gmra.mxu0 %v5524_v0  ;;  %v4935_v34 = vld [vmem:[#allocation5 + $0x24c] sm:$0xf]  ;;  %v3494_v39 = vor.u32 %v4903_v32, %v3491_v33  ;;  %v3795_v31 = vld [vmem:[#allocation5 + $0x3b8] sm:$0xf0] }
  0xc2   :  { %1775 = vmatmul.bf16.vlgmr.msra.gmra.mxu2 %v5534_v37  ;;  %1789 = vmatmul.bf16.vlgmr.msra.gmra.mxu3 %v5538_v42  ;;  %v5011_v32 = vld [vmem:[#allocation5 + $0x4ac] sm:$0xf] }
  0xc3   :  { %1823 = vmatpush.bf16.msrb.mxu2 %v3574_v35  ;;  %1837 = vmatpush.bf16.msrb.mxu3 %v3702_v40  ;;  %v3619_v35 = vld [vmem:[#allocation5 + $0x258] sm:$0xf0]  ;;  %v4113_v40 = vld [vmem:[#allocation5 + $0x628] sm:$0xf]  ;;  %v4995_v21 = vld [vmem:[#allocation5 + $0x42c] sm:$0xf] }
  0xc4   :  { %1796 = vmatpush.bf16.msrb.mxu0 %v4194_v48  ;;  %v3622_v45 = vor.u32 %v4935_v34, %v3619_v35  ;;  %v3475_v48 = vld [vmem:[#allocation5 + $0x138] sm:$0xf0]  ;;  %v4114_v51 = vor.u32 %v5061_v43, %v4113_v40  ;;  %v5043_v35 = vld [vmem:[#allocation5 + $0x5ac] sm:$0xf] }
  0xc5   :  { %1810 = vmatpush.bf16.msrb.mxu1 %v3430_v49  ;;  %v4931_v49 = vld [vmem:[#allocation5 + $0x22c] sm:$0xf]  ;;  %v3478_v55 = vor.u32 %v4899_v47, %v3475_v48  ;;  %v3923_v34 = vld [vmem:[#allocation5 + $0x4b8] sm:$0xf0] }
  0xc6   :  { %v3926_v43 = vor.u32 %v5011_v32, %v3923_v34  ;;  %v5007_v47 = vld [vmem:[#allocation5 + $0x48c] sm:$0xf] }
  0xc7   :  { %1824 = vmatpush.bf16.msrb.mxu2 %v3558_v50  ;;  %1838 = vmatpush.bf16.msrb.mxu3 %v3686_v54  ;;  %v3603_v50 = vld [vmem:[#allocation5 + $0x238] sm:$0xf0]  ;;  %v3350_v54 = vor.u32 %v4867_v44, %v3347_v46  ;;  %v4959_v32 = vld [vmem:[#allocation5 + $0x30c] sm:$0xf] }
  0xc8   :  { %1797 = vmatpush.bf16.msrb.mxu0 %v4178_v61  ;;  %v3606_v60 = vor.u32 %v4931_v49, %v3603_v50  ;;  %v3459_v61 = vld [vmem:[#allocation5 + $0x118] sm:$0xf0]  ;;  %v5039_v50 = vld [vmem:[#allocation5 + $0x58c] sm:$0xf] }
  0xc9   :  { %1811 = vmatpush.bf16.msrb.mxu1 %v3414_v62  ;;  %v4927_v62 = vld [vmem:[#allocation5 + $0x20c] sm:$0xf]  ;;  %v3462_v9 = vor.u32 %v4895_v59, %v3459_v61  ;;  %v3779_v46 = vld [vmem:[#allocation5 + $0x398] sm:$0xf0] }
  0xca   :  { %v3907_v49 = vld [vmem:[#allocation5 + $0x498] sm:$0xf0] }
  0xcb   :  { %1825 = vmatpush.bf16.msrb.mxu2 %v3542_v63  ;;  %1839 = vmatpush.bf16.msrb.mxu3 %v3670_v4  ;;  %v3587_v63 = vld [vmem:[#allocation5 + $0x218] sm:$0xf0]  ;;  %v4098_v4 = vor.u32 %v5057_v53, %v4097_v52  ;;  %v3910_v53 = vor.u32 %v5007_v47, %v3907_v49  ;;  %v4329_v49 = vld [vmem:[#allocation8 + $0xe0] sm:$0xf] }
  0xcc   :  { %1798 = vmatpush.bf16.msrb.mxu0 %v4162_v10  ;;  %v5083_v10 = vld [vmem:[#allocation5 + $0x6ec] sm:$0xf]  ;;  %v4163_v52 = vld [vmem:[#allocation5 + $0x698] sm:$0xf0] }
  0xcd   :  { %1812 = vmatpush.bf16.msrb.mxu1 %v3398_v12  ;;  %v4211_v12 = vld [vmem:[#allocation5 + $0x6f8] sm:$0xf0] }
  0xce   :  { %v4214_v20 = vor.u32 %v5083_v10, %v4211_v12  ;;  %v3891_v59 = vld [vmem:[#allocation5 + $0x478] sm:$0xf0]  ;;  %v5031_v12 = vld [vmem:[#allocation5 + $0x54c] sm:$0xf] }
  0xcf   :  { %1826 = vmatpush.bf16.msrb.mxu2 %v3526_v13  ;;  %1840 = vmatpush.bf16.msrb.mxu3 %v3654_v17  ;;  %v3590_v13 = vor.u32 %v4927_v62, %v3587_v63  ;;  %v4983_v17 = vld [vmem:[#allocation5 + $0x3cc] sm:$0xf]  ;;  %v4019_v61 = vld [vmem:[#allocation5 + $0x578] sm:$0xf0]  ;;  %v5560_v62 = vpop.f32.mrf.mxu0 }
  0xd0   :  { %1799 = vmatpush.bf16.msrb.mxu0 %v4146_v24  ;;  %v4067_v24 = vld [vmem:[#allocation5 + $0x5d8] sm:$0xf0]  ;;  %v3814_v27 = vor.u32 %v4983_v17, %v3811_v18  ;;  %v5067_v63 = vld [vmem:[#allocation5 + $0x66c] sm:$0xf]  ;;  %v5568_v47 = vpop.f32.mrf.mxu3 }
  0xd1   :  { %1813 = vmatpush.bf16.msrb.mxu1 %v3382_v25  ;;  %v5079_v25 = vld [vmem:[#allocation5 + $0x6cc] sm:$0xf]  ;;  %v4070_v29 = vor.u32 %v5047_v22, %v4067_v24  ;;  %v3875_v10 = vld [vmem:[#allocation5 + $0x458] sm:$0xf0]  ;;  %v5564_v22 = vpop.f32.mrf.mxu2 }
  0xd3   :  { %1827 = vmatpush.bf16.msrb.mxu2 %v3510_v26  ;;  %1841 = vmatpush.bf16.msrb.mxu3 %v3638_v30  ;;  %v4195_v26 = vld [vmem:[#allocation5 + $0x6d8] sm:$0xf0]  ;;  %v4979_v30 = vld [vmem:[#allocation5 + $0x3ac] sm:$0xf] }
  0xd4   :  { %1800 = vmatpush.bf16.msrb.mxu0 %v4130_v36  ;;  %v4198_v33 = vor.u32 %v5079_v25, %v4195_v26  ;;  %v4051_v36 = vld [vmem:[#allocation5 + $0x5b8] sm:$0xf0]  ;;  %v3798_v40 = vor.u32 %v4979_v30, %v3795_v31  ;;  %v5027_v26 = vld [vmem:[#allocation5 + $0x52c] sm:$0xf]  ;;  %v5566_v30 = vld [vmem:[#allocation7] sm:$0xf] }
  0xd5   :  { %1814 = vmatpush.bf16.msrb.mxu1 %v3366_v38  ;;  %v5075_v38 = vld [vmem:[#allocation5 + $0x6ac] sm:$0xf]  ;;  %v4054_v44 = vor.u32 %v5043_v35, %v4051_v36  ;;  %v3859_v25 = vld [vmem:[#allocation5 + $0x438] sm:$0xf0] }
  0xd6   :  { %v3862_v34 = vor.u32 %v4995_v21, %v3859_v25  ;;  %v3715_v36 = vld [vmem:[#allocation5 + $0x318] sm:$0xf0]  ;;  %v5100_v25 = vld [vmem:[#allocation8 + $0x6c] sm:$0xf0] }
  0xd7   :  { %1828 = vmatpush.bf16.msrb.mxu2 %v3494_v39  ;;  %1842 = vmatpush.bf16.msrb.mxu3 %v3622_v45  ;;  %v4179_v39 = vld [vmem:[#allocation5 + $0x6b8] sm:$0xf0]  ;;  %v4975_v45 = vld [vmem:[#allocation5 + $0x38c] sm:$0xf] }
  0xd8   :  { %1801 = vmatpush.bf16.msrb.mxu0 %v4114_v51  ;;  %v4182_v48 = vor.u32 %v5075_v38, %v4179_v39  ;;  %v5071_v51 = vld [vmem:[#allocation5 + $0x68c] sm:$0xf]  ;;  %v3843_v39 = vld [vmem:[#allocation5 + $0x418] sm:$0xf0] }
  0xd9   :  { %1815 = vmatpush.bf16.msrb.mxu1 %v3350_v54  ;;  %v4971_v54 = vld [vmem:[#allocation5 + $0x36c] sm:$0xf]  ;;  %v4166_v58 = vor.u32 %v5071_v51, %v4163_v52  ;;  %v4457_v51 = vld [vmem:[#allocation8 + $0x1e0] sm:$0xf]  ;;  %v5148_v52 = vld [vmem:[#allocation8 + $0x1ec] sm:$0xf0] }
  0xda   :  { %v4991_v38 = vld [vmem:[#allocation5 + $0x40c] sm:$0xf] }
  0xdb   :  { %1829 = vmatpush.bf16.msrb.mxu2 %v3478_v55  ;;  %1843 = vmatpush.bf16.msrb.mxu3 %v3606_v60  ;;  %v3763_v55 = vld [vmem:[#allocation5 + $0x378] sm:$0xf0]  ;;  %v5035_v60 = vld [vmem:[#allocation5 + $0x56c] sm:$0xf] }
  0xdc   :  { %1802 = vmatpush.bf16.msrb.mxu0 %v4098_v4  ;;  %v3766_v3 = vor.u32 %v4971_v54, %v3763_v55  ;;  %v3894_v4 = vor.u32 %v5003_v56, %v3891_v59  ;;  %v4022_v5 = vor.u32 %v5035_v60, %v4019_v61  ;;  %v4458_v56 = vor.u32 %v5148_v52, %v4457_v51  ;;  %v5112_v59 = vld [vmem:[#allocation8 + $0xcc] sm:$0xf0]  ;;  %v1554_v60 = vpop.f32.mrf.mxu2  ;;  %v4441_v61 = vld [vmem:[#allocation8 + $0x1c0] sm:$0xf] }
  0xdd   :  { %1816 = vmatpush.bf16.msrb.mxu1 %v3334_v8  ;;  %v4999_v8 = vld [vmem:[#allocation5 + $0x44c] sm:$0xf]  ;;  %v352_v52 = vperm.slane %v5566_v30, 1 }
  0xde   :  { %v3878_v17 = vor.u32 %v4999_v8, %v3875_v10  ;;  %v5108_v8 = vld [vmem:[#allocation8 + $0xac] sm:$0xf0]  ;;  %v4425_v10 = vld [vmem:[#allocation8 + $0x1a0] sm:$0xf] }
  0xdf   :  { %1830 = vmatpush.bf16.msrb.mxu2 %v3462_v9  ;;  %1844 = vmatpush.bf16.msrb.mxu3 %v3590_v13  ;;  %v4150_v9 = vor.u32 %v5067_v63, %v4147_v1  ;;  %v4003_v13 = vld [vmem:[#allocation5 + $0x558] sm:$0xf0]  ;;  %v5144_v63 = vld [vmem:[#allocation8 + $0x1cc] sm:$0xf0] }
  0xe0   :  { %1851 = vmatpush.bf16.msra.mxu0 %v3830_v14  ;;  %1817 = vmatmul.bf16.vlgmr.msrb.gmra.mxu1 %v5522_v57  ;;  %v5063_v14 = vld [vmem:[#allocation5 + $0x64c] sm:$0xf]  ;;  %v4006_v18 = vor.u32 %v5031_v12, %v4003_v13 }
  0xe1   :  { %1865 = vmatpush.bf16.msra.mxu1 %v3958_v15  ;;  %1803 = vmatmul.bf16.vlgmr.msrb.gmra.mxu0 %v5536_v41  ;;  %v4131_v15 = vld [vmem:[#allocation5 + $0x658] sm:$0xf0] }
  0xe2   :  { %1831 = vmatmul.bf16.vlgmr.msrb.gmra.mxu2 %v5528_v11  ;;  %1845 = vmatmul.bf16.vlgmr.msrb.gmra.mxu3 %v5524_v0  ;;  %v4035_v11 = vld [vmem:[#allocation5 + $0x598] sm:$0xf0]  ;;  %v3782_v0 = vor.u32 %v4975_v45, %v3779_v46  ;;  %v4134_v24 = vor.u32 %v5063_v14, %v4131_v15  ;;  %v5055_v46 = vld [vmem:[#allocation5 + $0x60c] sm:$0xf]  ;;  %v1568_v14 = vpop.f32.mrf.mxu3 }
  0xe3   :  { %1879 = vmatpush.bf16.msra.mxu2 %v4086_v16  ;;  %1893 = vmatpush.bf16.msra.mxu3 %v4214_v20  ;;  %v4038_v57 = vor.u32 %v5039_v50, %v4035_v11  ;;  %v3750_v16 = vor.u32 %v4967_v6, %v3747_v7  ;;  %v3731_v20 = vld [vmem:[#allocation5 + $0x338] sm:$0xf0]  ;;  %v5116_v50 = vld [vmem:[#allocation8 + $0xec] sm:$0xf0]  ;;  %v3718_v11 = vor.u32 %v4959_v32, %v3715_v36  ;;  %v4297_v7 = vld [vmem:[#allocation8 + $0xa0] sm:$0xf] }
  0xe4   :  { %1852 = vmatpush.bf16.msra.mxu0 %v3814_v27  ;;  %v3987_v27 = vld [vmem:[#allocation5 + $0x538] sm:$0xf0]  ;;  %v3734_v31 = vor.u32 %v4963_v19, %v3731_v20  ;;  %v4330_v55 = vor.u32 %v5116_v50, %v4329_v49  ;;  %v4442_v6 = vor.u32 %v5144_v63, %v4441_v61  ;;  %v4298_v15 = vor.u32 %v5108_v8, %v4297_v7  ;;  %v5136_v19 = vld [vmem:[#allocation8 + $0x18c] sm:$0xf0]  ;;  %v4377_v36 = vld [vmem:[#allocation8 + $0x140] sm:$0xf] }
  0xe5   :  { %1866 = vmatpush.bf16.msra.mxu1 %v3942_v28  ;;  %v5059_v28 = vld [vmem:[#allocation5 + $0x62c] sm:$0xf]  ;;  %v3990_v35 = vor.u32 %v5027_v26, %v3987_v27  ;;  %v3971_v45 = vld [vmem:[#allocation5 + $0x518] sm:$0xf0]  ;;  %v4393_v26 = vld [vmem:[#allocation8 + $0x160] sm:$0xf] }
  0xe6   :  { %v5124_v49 = vld [vmem:[#allocation8 + $0x12c] sm:$0xf0]  ;;  %v4459_v7 = vld [vmem:[#allocation8 + $0x1f0] sm:$0xf0] }
  0xe7   :  { %1880 = vmatpush.bf16.msra.mxu2 %v4070_v29  ;;  %1894 = vmatpush.bf16.msra.mxu3 %v4198_v33  ;;  %v4115_v29 = vld [vmem:[#allocation5 + $0x638] sm:$0xf0]  ;;  %v1526_v33 = vpop.f32.mrf.mxu0  ;;  %v5180_v61 = vld [vmem:[#allocation8 + $0x2ec] sm:$0xf0] }
  0xe8   :  { %1853 = vmatpush.bf16.msra.mxu0 %v3798_v40  ;;  %v1540_v40 = vpop.f32.mrf.mxu1  ;;  %v5120_v63 = vld [vmem:[#allocation8 + $0x10c] sm:$0xf0] }
  0xe9   :  { %1867 = vmatpush.bf16.msra.mxu1 %v3926_v43  ;;  %v4118_v43 = vor.u32 %v5059_v28, %v4115_v29 }
  0xeb   :  { %1881 = vmatpush.bf16.msra.mxu2 %v4054_v44  ;;  %1895 = vmatpush.bf16.msra.mxu3 %v4182_v48  ;;  %v5023_v44 = vld [vmem:[#allocation5 + $0x50c] sm:$0xf]  ;;  %v4099_v48 = vld [vmem:[#allocation5 + $0x618] sm:$0xf0] }
  0xec   :  { %1854 = vmatpush.bf16.msra.mxu0 %v3782_v0  ;;  %v351_v0 = vperm.slane %v5566_v30, 0  ;;  %v4102_v54 = vor.u32 %v5055_v46, %v4099_v48  ;;  %v5092_v46 = vld [vmem:[#allocation8 + $0x2c] sm:$0xf0]  ;;  %v4361_v48 = vld [vmem:[#allocation8 + $0x120] sm:$0xf] }
  0xed   :  { %1868 = vmatpush.bf16.msra.mxu1 %v3910_v53  ;;  %v3846_v53 = vor.u32 %v4991_v38, %v3843_v39  ;;  %v5128_v38 = vld [vmem:[#allocation8 + $0x14c] sm:$0xf0] }
  0xee   :  { %v1525_v1 = vadd.f32 %v5560_v62, %v351_v0  ;;  %v5140_v62 = vld [vmem:[#allocation8 + $0x1ac] sm:$0xf0] }
  0xef   :  { %1882 = vmatpush.bf16.msra.mxu2 %v4038_v57  ;;  %1896 = vmatpush.bf16.msra.mxu3 %v4166_v58  ;;  %v3974_v57 = vor.u32 %v5023_v44, %v3971_v45  ;;  %v4313_v58 = vld [vmem:[#allocation8 + $0xc0] sm:$0xf]  ;;  %v4378_v44 = vor.u32 %v5128_v38, %v4377_v36 }
  0xf0   :  { %1855 = vmatpush.bf16.msra.mxu0 %v3766_v3  ;;  %v1527_v3 = vadd.f32 %v1526_v33, %v351_v0  ;;  %v1539_v12 = vadd.f32 %v5562_v2, %v1525_v1  ;;  %v4233_v45 = vld [vmem:[#allocation8 + $0x20] sm:$0xf]  ;;  %v5114_v1 = vld [vmem:[#allocation8 + $0xe4] sm:$0xf] }
  0xf1   :  { %1869 = vmatpush.bf16.msra.mxu1 %v3894_v4  ;;  %v4314_v4 = vor.u32 %v5112_v59, %v4313_v58  ;;  %v4362_v58 = vor.u32 %v5124_v49, %v4361_v48  ;;  %v4345_v59 = vld [vmem:[#allocation8 + $0x100] sm:$0xf]  ;;  %v4411_v48 = vld [vmem:[#allocation8 + $0x190] sm:$0xf0] }
  0xf2   :  { %v1541_v13 = vadd.f32 %v1540_v40, %v1527_v3  ;;  %v4331_v3 = vld [vmem:[#allocation8 + $0xf0] sm:$0xf0]  ;;  %v4537_v38 = vld [vmem:[#allocation8 + $0x280] sm:$0xf] }
  0xf3   :  { %1883 = vmatpush.bf16.msra.mxu2 %v4022_v5  ;;  %1897 = vmatpush.bf16.msra.mxu3 %v4150_v9  ;;  %v1580_v5 = vpop.f32.mrf.mxu0  ;;  %v1594_v9 = vpop.f32.mrf.mxu1 }
  0xf4   :  { %1856 = vmatpush.bf16.msra.mxu0 %v3750_v16  ;;  %v4281_v16 = vld [vmem:[#allocation8 + $0x80] sm:$0xf]  ;;  %v1555_v20 = vadd.f32 %v1554_v60, %v1541_v13 }
  0xf5   :  { %1870 = vmatpush.bf16.msra.mxu1 %v3878_v17  ;;  %v5104_v17 = vld [vmem:[#allocation8 + $0x8c] sm:$0xf0]  ;;  %v4585_v60 = vld [vmem:[#allocation8 + $0x2e0] sm:$0xf] }
  0xf6   :  { %v4282_v21 = vor.u32 %v5104_v17, %v4281_v16  ;;  %v1569_v28 = vadd.f32 %v1568_v14, %v1555_v20  ;;  %v4569_v13 = vld [vmem:[#allocation8 + $0x2c0] sm:$0xf]  ;;  %v5176_v16 = vld [vmem:[#allocation8 + $0x2cc] sm:$0xf0] }
  0xf7   :  { %1884 = vmatpush.bf16.msra.mxu2 %v4006_v18  ;;  %1898 = vmatpush.bf16.msra.mxu3 %v4134_v24  ;;  %v4409_v18 = vld [vmem:[#allocation8 + $0x180] sm:$0xf]  ;;  %v4570_v20 = vor.u32 %v5176_v16, %v4569_v13 }
  0xf8   :  { %1857 = vmatpush.bf16.msra.mxu0 %v3734_v31  ;;  %v4410_v2 = vor.u32 %v5136_v19, %v4409_v18  ;;  %v4265_v24 = vld [vmem:[#allocation8 + $0x60] sm:$0xf]  ;;  %v1622_v31 = vpop.f32.mrf.mxu3  ;;  %v5142_v19 = vld [vmem:[#allocation8 + $0x1c4] sm:$0xf] }
  0xf9   :  { %1871 = vmatpush.bf16.msra.mxu1 %v3862_v34  ;;  %v4266_v33 = vor.u32 %v5100_v25, %v4265_v24  ;;  %v4249_v34 = vld [vmem:[#allocation8 + $0x40] sm:$0xf]  ;;  %v1623_v8 = vadd.f32 %v1622_v31, %v352_v52  ;;  %v4299_v31 = vld [vmem:[#allocation8 + $0xb0] sm:$0xf0] }
  0xfa   :  { %v4553_v25 = vld [vmem:[#allocation8 + $0x2a0] sm:$0xf] }
  0xfb   :  { %1885 = vmatpush.bf16.msra.mxu2 %v3990_v35  ;;  %1899 = vmatpush.bf16.msra.mxu3 %v4118_v43  ;;  %v1582_v29 = vpop.f32.mrf.mxu0  ;;  %v1596_v32 = vpop.f32.mrf.mxu1  ;;  %v5096_v35 = vld [vmem:[#allocation8 + $0x4c] sm:$0xf0]  ;;  %v4489_v16 = vld [vmem:[#allocation8 + $0x220] sm:$0xf] }
  0xfc   :  { %1858 = vmatpush.bf16.msra.mxu0 %v3718_v11  ;;  %v1583_v40 = vadd.f32 %v1582_v29, %v1569_v28  ;;  %v4250_v43 = vor.u32 %v5096_v35, %v4249_v34  ;;  %v5106_v29 = vld [vmem:[#allocation8 + $0xa4] sm:$0xf]  ;;  %v4427_v34 = vld [vmem:[#allocation8 + $0x1b0] sm:$0xf0] }
  0xfd   :  { %1872 = vmatpush.bf16.msra.mxu1 %v3846_v53  ;;  %v4234_v53 = vor.u32 %v5092_v46, %v4233_v45  ;;  %v4302_v36 = vor.u32 %v5106_v29, %v4299_v31  ;;  %v4283_v45 = vld [vmem:[#allocation8 + $0x90] sm:$0xf0]  ;;  %v5118_v29 = vld [vmem:[#allocation8 + $0x104] sm:$0xf]  ;;  %v4473_v31 = vld [vmem:[#allocation8 + $0x200] sm:$0xf] }
  0xfe   :  { %v1597_v11 = vadd.f32 %v1596_v32, %v1583_v40 }
  0xff   :  { %1886 = vmatpush.bf16.msra.mxu2 %v3974_v57  ;;  %1900 = vmatpush.bf16.msra.mxu3 %v4102_v54  ;;  %v4217_v57 = vld [vmem:[#allocation8] sm:$0xf]  ;;  %v5088_v54 = vld [vmem:[#allocation8 + $0xc] sm:$0xf0] }
 0x100   :  { %2697 = vmatpush.bf16.msrb.mxu0 %v4330_v55  ;;  %1873 = vmatmul.bf16.vlgmr.msra.gmra.mxu1 %v5534_v37  ;;  %v1553_v37 = vadd.f32 %v5564_v22, %v1539_v12  ;;  %v4334_v12 = vor.u32 %v5114_v1, %v4331_v3 }
 0x101   :  { %2711 = vmatpush.bf16.msrb.mxu1 %v4458_v56  ;;  %1859 = vmatmul.bf16.vlgmr.msra.gmra.mxu0 %v5531_v23  ;;  %v4426_v23 = vor.u32 %v5140_v62, %v4425_v10  ;;  %v1624_v56 = vpop.f32.mrf.mxu3  ;;  %v4346_v62 = vor.u32 %v5120_v63, %v4345_v59  ;;  %v5130_v59 = vld [vmem:[#allocation8 + $0x164] sm:$0xf] }
 0x102   :  { %1887 = vmatmul.bf16.vlgmr.msra.gmra.mxu2 %v5538_v42  ;;  %1901 = vmatmul.bf16.vlgmr.msra.gmra.mxu3 %v5536_v41  ;;  %v1608_v42 = vpop.f32.mrf.mxu2  ;;  %v5132_v41 = vld [vmem:[#allocation8 + $0x16c] sm:$0xf0]  ;;  %v1567_v27 = vadd.f32 %v5568_v47, %v1553_v37  ;;  %v4443_v37 = vld [vmem:[#allocation8 + $0x1d0] sm:$0xf0] }
 0x103   :  { %v4394_v22 = vor.u32 %v5132_v41, %v4393_v26  ;;  %v1636_v51 = vpop.f32.mrf.mxu0  ;;  %v1650_v0 = vpop.f32.mrf.mxu1  ;;  %v5172_v26 = vld [vmem:[#allocation8 + $0x2ac] sm:$0xf0]  ;;  %v1625_v41 = vadd.f32 %v1624_v56, %v352_v52  ;;  %v4446_v28 = vor.u32 %v5142_v19, %v4443_v37  ;;  %v4521_v52 = vld [vmem:[#allocation8 + $0x260] sm:$0xf]  ;;  %v4267_v56 = vld [vmem:[#allocation8 + $0x70] sm:$0xf0] }
 0x104   :  { %2698 = vmatpush.bf16.msrb.mxu0 %v4314_v4  ;;  %v1581_v39 = vadd.f32 %v1580_v5, %v1567_v27  ;;  %v4586_v4 = vor.u32 %v5180_v61, %v4585_v60  ;;  %v4554_v32 = vor.u32 %v5172_v26, %v4553_v25  ;;  %v4395_v60 = vld [vmem:[#allocation8 + $0x170] sm:$0xf0] }
 0x105   :  { %2712 = vmatpush.bf16.msrb.mxu1 %v4442_v6  ;;  %v5146_v6 = vld [vmem:[#allocation8 + $0x1e4] sm:$0xf]  ;;  %v4363_v25 = vld [vmem:[#allocation8 + $0x130] sm:$0xf0] }
 0x106   :  { %v1595_v50 = vadd.f32 %v1594_v9, %v1581_v39  ;;  %v4218_v9 = vor.u32 %v5088_v54, %v4217_v57  ;;  %2725 = vmatpush.bf16.msrb.mxu2 %v4586_v4  ;;  %v4462_v14 = vor.u32 %v5146_v6, %v4459_v7  ;;  %v5168_v39 = vld [vmem:[#allocation8 + $0x28c] sm:$0xf0]  ;;  %v5094_v4 = vld [vmem:[#allocation8 + $0x44] sm:$0xf] }
 0x107   :  { %v4538_v46 = vor.u32 %v5168_v39, %v4537_v38  ;;  %v5160_v6 = vld [vmem:[#allocation8 + $0x24c] sm:$0xf0]  ;;  %v4587_v38 = vld [vmem:[#allocation8 + $0x2f0] sm:$0xf0] }
 0x108   :  { %2699 = vmatpush.bf16.msrb.mxu0 %v4298_v15  ;;  %v1609_v5 = vadd.f32 %v1608_v42, %v1595_v50  ;;  %v5110_v15 = vld [vmem:[#allocation8 + $0xc4] sm:$0xf]  ;;  %v1637_v42 = vadd.f32 %v1636_v51, %v1623_v8  ;;  %v4398_v8 = vor.u32 %v5130_v59, %v4395_v60  ;;  %v4347_v39 = vld [vmem:[#allocation8 + $0x110] sm:$0xf0]  ;;  %v4713_v59 = vld [vmem:[#allocation8 + $0x3e0] sm:$0xf] }
 0x109   :  { %2713 = vmatpush.bf16.msrb.mxu1 %v4426_v23  ;;  %v4315_v23 = vld [vmem:[#allocation8 + $0xd0] sm:$0xf0]  ;;  %v5212_v60 = vld [vmem:[#allocation8 + $0x3ec] sm:$0xf0] }
 0x10a   :  { %v1610_v47 = vpop.f32.mrf.mxu2  ;;  %v1907_v17 = vmax.f32 %v1609_v5, 0.0  ;;  %v4318_v24 = vor.u32 %v5110_v15, %v4315_v23  ;;  %2726 = vmatpush.bf16.msrb.mxu2 %v4570_v20  ;;  %v1651_v35 = vadd.f32 %v1650_v0, %v1637_v42  ;;  %v5164_v0 = vld [vmem:[#allocation8 + $0x26c] sm:$0xf0]  ;;  %v4505_v5 = vld [vmem:[#allocation8 + $0x240] sm:$0xf] }
 0x10b   :  { %v1611_v55 = vadd.f32 %v1610_v47, %v1597_v11  ;;  %v1652_v27 = vpop.f32.mrf.mxu1  ;;  %v5134_v47 = vld [vmem:[#allocation8 + $0x184] sm:$0xf]  ;;  %v4235_v42 = vld [vmem:[#allocation8 + $0x30] sm:$0xf0] }
 0x10c   :  { %2700 = vmatpush.bf16.msrb.mxu0 %v4282_v21  ;;  %v4414_v57 = vor.u32 %v5134_v47, %v4411_v48  ;;  %v5090_v20 = vld [vmem:[#allocation8 + $0x24] sm:$0xf]  ;;  %v5149_v47 = vld [vmem:[#allocation8 + $0x1f4] sm:$0xf0] }
 0x10d   :  { %2714 = vmatpush.bf16.msrb.mxu1 %v4410_v2  ;;  %v1911_v10 = vmax.f32 %v1611_v55, 0.0  ;;  %v1638_v2 = vpop.f32.mrf.mxu0  ;;  %v5098_v55 = vld [vmem:[#allocation8 + $0x64] sm:$0xf] }
 0x10e   :  { %v1639_v40 = vadd.f32 %v1638_v2, %v1625_v41  ;;  %2727 = vmatpush.bf16.msrb.mxu2 %v4554_v32  ;;  %v4270_v3 = vor.u32 %v5098_v55, %v4267_v56  ;;  %v5086_v41 = vld [vmem:[#allocation8 + $0x4] sm:$0xf]  ;;  %v5152_v32 = vld [vmem:[#allocation8 + $0x20c] sm:$0xf0] }
 0x10f   :  { %v5580_v21 = vpack.c.bf16 %v1911_v10, %v1907_v17  ;;  %v5126_v10 = vld [vmem:[#allocation8 + $0x144] sm:$0xf]  ;;  %v5156_v17 = vld [vmem:[#allocation8 + $0x22c] sm:$0xf0] }
 0x110   :  { %2701 = vmatpush.bf16.msrb.mxu0 %v4266_v33  ;;  %v1678_v33 = vpop.f32.mrf.mxu3  ;;  %v4490_v2 = vor.u32 %v5156_v17, %v4489_v16  ;;  %v4417_v16 = vld [vmem:[#allocation8 + $0x188] sm:$0xf]  ;;  %v5137_v17 = vld [vmem:[#allocation8 + $0x194] sm:$0xf0] }
 0x111   :  { %2715 = vmatpush.bf16.msrb.mxu1 %v4394_v22  ;;  %v5138_v22 = vld [vmem:[#allocation8 + $0x1a4] sm:$0xf] }
 0x112   :  { %v1664_v18 = vpop.f32.mrf.mxu2  ;;  %2728 = vmatpush.bf16.msrb.mxu2 %v4538_v46  ;;  %v4465_v46 = vld [vmem:[#allocation8 + $0x1e8] sm:$0xf] }
 0x113   :  { %v1665_v49 = vadd.f32 %v1664_v18, %v1651_v35  ;;  %v4474_v35 = vor.u32 %v5152_v32, %v4473_v31 }
 0x114   :  { %2702 = vmatpush.bf16.msrb.mxu0 %v4250_v43  ;;  %v4430_v43 = vor.u32 %v5138_v22, %v4427_v34 }
 0x115   :  { %2716 = vmatpush.bf16.msrb.mxu1 %v4378_v44  ;;  %v5102_v44 = vld [vmem:[#allocation8 + $0x84] sm:$0xf]  ;;  %v1679_v61 = vadd.f32 %v1678_v33, %v1665_v49  ;;  %v4350_v49 = vor.u32 %v5118_v29, %v4347_v39  ;;  %v5133_v29 = vld [vmem:[#allocation8 + $0x174] sm:$0xf0] }
 0x116   :  { %v4286_v51 = vor.u32 %v5102_v44, %v4283_v45  ;;  %v5097_v39 = vld [vmem:[#allocation8 + $0x54] sm:$0xf0] }
 0x118   :  { %2703 = vmatpush.bf16.msrb.mxu0 %v4234_v53  ;;  %v1653_v53 = vadd.f32 %v1652_v27, %v1639_v40  ;;  %v1680_v1 = vpop.f32.mrf.mxu3  ;;  %v4219_v27 = vld [vmem:[#allocation8 + $0x10] sm:$0xf0]  ;;  %v4337_v40 = vld [vmem:[#allocation8 + $0xe8] sm:$0xf] }
 0x119   :  { %2717 = vmatpush.bf16.msrb.mxu1 %v4362_v58  ;;  %v4522_v58 = vor.u32 %v5164_v0, %v4521_v52  ;;  %v4222_v48 = vor.u32 %v5086_v41, %v4219_v27  ;;  %v4321_v52 = vld [vmem:[#allocation8 + $0xc8] sm:$0xf]  ;;  %v5113_v0 = vld [vmem:[#allocation8 + $0xd4] sm:$0xf0]  ;;  %v5162_v41 = vld [vmem:[#allocation8 + $0x264] sm:$0xf] }
 0x11a   :  { %v1666_v50 = vpop.f32.mrf.mxu2  ;;  %v4322_v56 = vor.u32 %v5113_v0, %v4321_v52  ;;  %v4523_v27 = vld [vmem:[#allocation8 + $0x270] sm:$0xf0]  ;;  %v5093_v52 = vld [vmem:[#allocation8 + $0x34] sm:$0xf0] }
 0x11b   :  { %v1667_v63 = vadd.f32 %v1666_v50, %v1653_v53  ;;  %2729 = vmatpush.bf16.msrb.mxu2 %v4522_v58  ;;  %v4571_v53 = vld [vmem:[#allocation8 + $0x2d0] sm:$0xf0]  ;;  %v4305_v58 = vld [vmem:[#allocation8 + $0xa8] sm:$0xf]  ;;  %v4526_v31 = vor.u32 %v5162_v41, %v4523_v27  ;;  %v5143_v41 = vld [vmem:[#allocation8 + $0x1cc] sm:$0xf] }
 0x11c   :  { %2704 = vmatpush.bf16.msrb.mxu0 %v4218_v9  ;;  %v4251_v9 = vld [vmem:[#allocation8 + $0x50] sm:$0xf0]  ;;  %v4451_v27 = vld [vmem:[#allocation8 + $0x1d8] sm:$0xf0] }
 0x11d   :  { %2718 = vmatpush.bf16.msrb.mxu1 %v4346_v62  ;;  %v1706_v54 = vpop.f32.mrf.mxu1  ;;  %v4379_v62 = vld [vmem:[#allocation8 + $0x150] sm:$0xf0]  ;;  %v1681_v13 = vadd.f32 %v1680_v1, %v1667_v63  ;;  %v4254_v15 = vor.u32 %v5094_v4, %v4251_v9  ;;  %v5109_v63 = vld [vmem:[#allocation8 + $0xb4] sm:$0xf0]  ;;  %v4714_v1 = vor.u32 %v5212_v60, %v4713_v59  ;;  %v4697_v9 = vld [vmem:[#allocation8 + $0x3c0] sm:$0xf] }
 0x11e   :  { %v1692_v11 = vpop.f32.mrf.mxu0  ;;  %v4382_v23 = vor.u32 %v5126_v10, %v4379_v62  ;;  %v4555_v4 = vld [vmem:[#allocation8 + $0x2b0] sm:$0xf0]  ;;  %v5208_v10 = vld [vmem:[#allocation8 + $0x3cc] sm:$0xf0]  ;;  %v5166_v62 = vld [vmem:[#allocation8 + $0x284] sm:$0xf] }
 0x11f   :  { %2705 = vmatmul.bf16.vlgmr.msrb.gmra.mxu0 %v5580_v21  ;;  %v1693_v7 = vadd.f32 %v1692_v11, %v1679_v61  ;;  %v5174_v11 = vld [vmem:[#allocation8 + $0x2c4] sm:$0xf]  ;;  %2739 = vmatpush.bf16.msrb.mxu3 %v4714_v1  ;;  %v4225_v60 = vld [vmem:[#allocation8 + $0x8] sm:$0xf] }
 0x120   :  { %2753 = vmatpush.bf16.msra.mxu0 %v4334_v12  ;;  %v4506_v12 = vor.u32 %v5160_v6, %v4505_v5  ;;  %v4574_v55 = vor.u32 %v5174_v11, %v4571_v53  ;;  %v4433_v5 = vld [vmem:[#allocation8 + $0x1a8] sm:$0xf]  ;;  %v5141_v6 = vld [vmem:[#allocation8 + $0x1b4] sm:$0xf0]  ;;  %v5196_v11 = vld [vmem:[#allocation8 + $0x36c] sm:$0xf0] }
 0x121   :  { %2767 = vmatpush.bf16.msra.mxu1 %v4462_v14  ;;  %v1707_v18 = vadd.f32 %v1706_v54, %v1693_v7  ;;  %v5145_v54 = vld [vmem:[#allocation8 + $0x1d4] sm:$0xf0]  ;;  %v5154_v53 = vld [vmem:[#allocation8 + $0x224] sm:$0xf]  ;;  %v4353_v1 = vld [vmem:[#allocation8 + $0x108] sm:$0xf] }
 0x122   :  { %2730 = vmatpush.bf16.msrb.mxu2 %v4506_v12  ;;  %v4434_v12 = vor.u32 %v5141_v6, %v4433_v5  ;;  %v5192_v6 = vld [vmem:[#allocation8 + $0x34c] sm:$0xf0] }
 0x123   :  { %v1908_v33 = vmax.f32 %v1707_v18, 0.0 }
 0x124   :  { %2754 = vmatpush.bf16.msra.mxu0 %v4318_v24  ;;  %v5122_v24 = vld [vmem:[#allocation8 + $0x124] sm:$0xf] }
 0x125   :  { %2768 = vmatpush.bf16.msra.mxu1 %v4446_v28  ;;  %v1708_v37 = vpop.f32.mrf.mxu1  ;;  %v4238_v28 = vor.u32 %v5090_v20, %v4235_v42  ;;  %v4366_v34 = vor.u32 %v5122_v24, %v4363_v25  ;;  %v4681_v20 = vld [vmem:[#allocation8 + $0x3a0] sm:$0xf]  ;;  %v5204_v42 = vld [vmem:[#allocation8 + $0x3ac] sm:$0xf0]  ;;  %v4418_v24 = vor.u32 %v5137_v17, %v4417_v16  ;;  %v5101_v25 = vld [vmem:[#allocation8 + $0x74] sm:$0xf0] }
 0x126   :  { %v1694_v14 = vpop.f32.mrf.mxu0  ;;  %2731 = vmatpush.bf16.msrb.mxu2 %v4490_v2  ;;  %v5587_v2 = vpop.f32.mrf.mxu2  ;;  %v4617_v17 = vld [vmem:[#allocation8 + $0x320] sm:$0xf] }
 0x127   :  { %v1695_v19 = vadd.f32 %v1694_v14, %v1681_v13  ;;  %v4289_v13 = vld [vmem:[#allocation8 + $0x88] sm:$0xf]  ;;  %v5105_v14 = vld [vmem:[#allocation8 + $0x94] sm:$0xf0] }
 0x128   :  { %2755 = vmatpush.bf16.msra.mxu0 %v4302_v36  ;;  %v5178_v36 = vld [vmem:[#allocation8 + $0x2e4] sm:$0xf] }
 0x129   :  { %2769 = vmatpush.bf16.msra.mxu1 %v4430_v43  ;;  %v1709_v26 = vadd.f32 %v1708_v37, %v1695_v19  ;;  %v5117_v43 = vld [vmem:[#allocation8 + $0xf4] sm:$0xf0]  ;;  %v4590_v44 = vor.u32 %v5178_v36, %v4587_v38  ;;  %v4290_v19 = vor.u32 %v5105_v14, %v4289_v13  ;;  %v4273_v37 = vld [vmem:[#allocation8 + $0x68] sm:$0xf]  ;;  %v5147_v14 = vld [vmem:[#allocation8 + $0x1ec] sm:$0xf] }
 0x12a   :  { %v4338_v50 = vor.u32 %v5117_v43, %v4337_v40  ;;  %2732 = vmatpush.bf16.msrb.mxu2 %v4474_v35  ;;  %v4274_v32 = vor.u32 %v5101_v25, %v4273_v37  ;;  %v5589_v35 = vpop.f32.mrf.mxu3  ;;  %v4257_v38 = vld [vmem:[#allocation8 + $0x48] sm:$0xf]  ;;  %v4507_v43 = vld [vmem:[#allocation8 + $0x250] sm:$0xf0]  ;;  %v4323_v25 = vld [vmem:[#allocation8 + $0xd8] sm:$0xf0] }
 0x12b   :  { %v1912_v22 = vmax.f32 %v1709_v26, 0.0  ;;  %v4682_v26 = vor.u32 %v5204_v42, %v4681_v20 }
 0x12c   :  { %2756 = vmatpush.bf16.msra.mxu0 %v4286_v51  ;;  %v4466_v51 = vor.u32 %v5149_v47, %v4465_v46  ;;  %v5129_v46 = vld [vmem:[#allocation8 + $0x154] sm:$0xf0] }
 0x12d   :  { %2770 = vmatpush.bf16.msra.mxu1 %v4414_v57  ;;  %v5583_v45 = vpack.c.bf16 %v1912_v22, %v1908_v33  ;;  %v4449_v57 = vld [vmem:[#allocation8 + $0x1c8] sm:$0xf]  ;;  %v4665_v33 = vld [vmem:[#allocation8 + $0x380] sm:$0xf]  ;;  %v5200_v22 = vld [vmem:[#allocation8 + $0x38c] sm:$0xf0] }
 0x12e   :  { %2781 = vmatpush.bf16.msra.mxu2 %v4590_v44  ;;  %v4450_v61 = vor.u32 %v5145_v54, %v4449_v57  ;;  %v4666_v40 = vor.u32 %v5200_v22, %v4665_v33  ;;  %v4385_v44 = vld [vmem:[#allocation8 + $0x148] sm:$0xf]  ;;  %v4491_v57 = vld [vmem:[#allocation8 + $0x230] sm:$0xf0]  ;;  %v1722_v59 = vpop.f32.mrf.mxu2 }
 0x12f   :  { %2719 = vmatmul.bf16.vlgmr.msrb.gmra.mxu1 %v5583_v45  ;;  %v4369_v54 = vld [vmem:[#allocation8 + $0x128] sm:$0xf] }
 0x130   :  { %2757 = vmatpush.bf16.msra.mxu0 %v4270_v3  ;;  %v5170_v3 = vld [vmem:[#allocation8 + $0x2a4] sm:$0xf] }
 0x131   :  { %2771 = vmatpush.bf16.msra.mxu1 %v4398_v8  ;;  %v4558_v7 = vor.u32 %v5170_v3, %v4555_v4  ;;  %v4306_v8 = vor.u32 %v5109_v63, %v4305_v58  ;;  %v353_v58 = vperm.slane %v5566_v30, 2  ;;  %v5089_v63 = vld [vmem:[#allocation8 + $0x14] sm:$0xf0]  ;;  %v4633_v3 = vld [vmem:[#allocation8 + $0x340] sm:$0xf] }
 0x132   :  { %2782 = vmatpush.bf16.msra.mxu2 %v4574_v55  ;;  %v5125_v55 = vld [vmem:[#allocation8 + $0x134] sm:$0xf0]  ;;  %v1736_v13 = vpop.f32.mrf.mxu3  ;;  %v4226_v16 = vor.u32 %v5089_v63, %v4225_v60  ;;  %v4683_v63 = vld [vmem:[#allocation8 + $0x3b0] sm:$0xf0] }
 0x133   :  { %v4370_v5 = vor.u32 %v5125_v55, %v4369_v54  ;;  %v5135_v54 = vld [vmem:[#allocation8 + $0x18c] sm:$0xf]  ;;  %v4419_v55 = vld [vmem:[#allocation8 + $0x198] sm:$0xf0] }
 0x134   :  { %2758 = vmatpush.bf16.msra.mxu0 %v4254_v15  ;;  %v4698_v15 = vor.u32 %v5208_v10, %v4697_v9  ;;  %v5121_v9 = vld [vmem:[#allocation8 + $0x114] sm:$0xf0]  ;;  %v5115_v10 = vld [vmem:[#allocation8 + $0xec] sm:$0xf] }
 0x135   :  { %2772 = vmatpush.bf16.msra.mxu1 %v4382_v23  ;;  %v4539_v23 = vld [vmem:[#allocation8 + $0x290] sm:$0xf0] }
 0x136   :  { %2783 = vmatpush.bf16.msra.mxu2 %v4558_v7  ;;  %v4542_v18 = vor.u32 %v5166_v62, %v4539_v23  ;;  %2740 = vmatpush.bf16.msrb.mxu3 %v4698_v15  ;;  %v5150_v7 = vld [vmem:[#allocation8 + $0x204] sm:$0xf]  ;;  %v4339_v62 = vld [vmem:[#allocation8 + $0xf8] sm:$0xf0]  ;;  %v1721_v23 = vadd.f32 %v5587_v2, %v353_v58  ;;  %v4601_v2 = vld [vmem:[#allocation8 + $0x300] sm:$0xf] }
 0x137   :  { %v4467_v15 = vld [vmem:[#allocation8 + $0x1f8] sm:$0xf0]  ;;  %v4342_v37 = vor.u32 %v5115_v10, %v4339_v62 }
 0x138   :  { %2759 = vmatpush.bf16.msra.mxu0 %v4238_v28  ;;  %v4401_v28 = vld [vmem:[#allocation8 + $0x168] sm:$0xf]  ;;  %v4470_v42 = vor.u32 %v5147_v14, %v4467_v15 }
 0x139   :  { %2773 = vmatpush.bf16.msra.mxu1 %v4366_v34  ;;  %v5158_v34 = vld [vmem:[#allocation8 + $0x244] sm:$0xf]  ;;  %v4402_v36 = vor.u32 %v5133_v29, %v4401_v28  ;;  %v1735_v28 = vadd.f32 %v5589_v35, %v1721_v23  ;;  %v1723_v29 = vadd.f32 %v1722_v59, %v353_v58  ;;  %v4435_v35 = vld [vmem:[#allocation8 + $0x1b8] sm:$0xf0]  ;;  %v5095_v23 = vld [vmem:[#allocation8 + $0x4c] sm:$0xf] }
 0x13a   :  { %2784 = vmatpush.bf16.msra.mxu2 %v4542_v18  ;;  %2741 = vmatpush.bf16.msrb.mxu3 %v4682_v26  ;;  %v4510_v47 = vor.u32 %v5158_v34, %v4507_v43  ;;  %v5188_v18 = vld [vmem:[#allocation8 + $0x32c] sm:$0xf0]  ;;  %v5210_v34 = vld [vmem:[#allocation8 + $0x3e4] sm:$0xf]  ;;  %v5139_v43 = vld [vmem:[#allocation8 + $0x1ac] sm:$0xf] }
 0x13b   :  { %v4618_v20 = vor.u32 %v5188_v18, %v4617_v17 }
 0x13c   :  { %2760 = vmatpush.bf16.msra.mxu0 %v4222_v48  ;;  %v4258_v48 = vor.u32 %v5097_v39, %v4257_v38  ;;  %v4454_v38 = vor.u32 %v5143_v41, %v4451_v27  ;;  %v5107_v39 = vld [vmem:[#allocation8 + $0xac] sm:$0xf] }
 0x13d   :  { %2774 = vmatpush.bf16.msra.mxu1 %v4350_v49  ;;  %v4241_v49 = vld [vmem:[#allocation8 + $0x28] sm:$0xf]  ;;  %v1762_v26 = vpop.f32.mrf.mxu1 }
 0x13e   :  { %2785 = vmatpush.bf16.msra.mxu2 %v4526_v31  ;;  %2742 = vmatpush.bf16.msrb.mxu3 %v4666_v40  ;;  %v1748_v4 = vpop.f32.mrf.mxu0  ;;  %v5184_v31 = vld [vmem:[#allocation8 + $0x30c] sm:$0xf0]  ;;  %v4307_v40 = vld [vmem:[#allocation8 + $0xb8] sm:$0xf0] }
 0x13f   :  { %2761 = vmatmul.bf16.vlgmr.msra.gmra.mxu0 %v5580_v21  ;;  %v4602_v22 = vor.u32 %v5184_v31, %v4601_v2 }
 0x140   :  { %2809 = vmatpush.bf16.msrb.mxu0 %v4338_v50  ;;  %2775 = vmatmul.bf16.vlgmr.msra.gmra.mxu1 %v5583_v45  ;;  %v4649_v50 = vld [vmem:[#allocation8 + $0x360] sm:$0xf] }
 0x141   :  { %2823 = vmatpush.bf16.msrb.mxu1 %v4466_v51  ;;  %v4386_v51 = vor.u32 %v5129_v46, %v4385_v44  ;;  %v4650_v0 = vor.u32 %v5196_v11, %v4649_v50  ;;  %v1749_v50 = vadd.f32 %v1748_v4, %v1735_v28  ;;  %v4275_v4 = vld [vmem:[#allocation8 + $0x78] sm:$0xf0]  ;;  %v5091_v28 = vld [vmem:[#allocation8 + $0x2c] sm:$0xf] }
 0x142   :  { %2786 = vmatpush.bf16.msra.mxu2 %v4510_v47  ;;  %v5206_v47 = vld [vmem:[#allocation8 + $0x3c4] sm:$0xf] }
 0x143   :  { %2743 = vmatpush.bf16.msrb.mxu3 %v4650_v0  ;;  %v4438_v0 = vor.u32 %v5139_v43, %v4435_v35  ;;  %v5087_v35 = vld [vmem:[#allocation8 + $0xc] sm:$0xf] }
 0x144   :  { %2810 = vmatpush.bf16.msrb.mxu0 %v4322_v56  ;;  %v4494_v56 = vor.u32 %v5154_v53, %v4491_v57  ;;  %v5103_v53 = vld [vmem:[#allocation8 + $0x8c] sm:$0xf]  ;;  %v4291_v57 = vld [vmem:[#allocation8 + $0x98] sm:$0xf0] }
 0x145   :  { %2824 = vmatpush.bf16.msrb.mxu1 %v4450_v61  ;;  %v4242_v61 = vor.u32 %v5093_v52, %v4241_v49  ;;  %v1737_v49 = vadd.f32 %v1736_v13, %v1723_v29  ;;  %v1790_v11 = vpop.f32.mrf.mxu3  ;;  %v1764_v59 = vpop.f32.mrf.mxu1  ;;  %v4294_v60 = vor.u32 %v5103_v53, %v4291_v57  ;;  %v4667_v13 = vld [vmem:[#allocation8 + $0x390] sm:$0xf0]  ;;  %v4243_v29 = vld [vmem:[#allocation8 + $0x38] sm:$0xf0] }
 0x146   :  { %2787 = vmatpush.bf16.msra.mxu2 %v4494_v56  ;;  %v1750_v46 = vpop.f32.mrf.mxu0  ;;  %v1763_v56 = vadd.f32 %v1762_v26, %v1749_v50  ;;  %v5119_v50 = vld [vmem:[#allocation8 + $0x10c] sm:$0xf] }
 0x147   :  { %v1751_v58 = vadd.f32 %v1750_v46, %v1737_v49 }
 0x148   :  { %2811 = vmatpush.bf16.msrb.mxu0 %v4306_v8  ;;  %v4475_v8 = vld [vmem:[#allocation8 + $0x210] sm:$0xf0] }
 0x149   :  { %2825 = vmatpush.bf16.msrb.mxu1 %v4434_v12  ;;  %v4634_v12 = vor.u32 %v5192_v6, %v4633_v3  ;;  %v4478_v30 = vor.u32 %v5150_v7, %v4475_v8  ;;  %v5099_v3 = vld [vmem:[#allocation8 + $0x6c] sm:$0xf]  ;;  %v1765_v62 = vadd.f32 %v1764_v59, %v1751_v58 }
 0x14a   :  { %v5131_v8 = vld [vmem:[#allocation8 + $0x16c] sm:$0xf] }
 0x14b   :  { %2744 = vmatpush.bf16.msrb.mxu3 %v4634_v12  ;;  %2788 = vmatpush.bf16.msra.mxu2 %v4478_v30  ;;  %v4278_v12 = vor.u32 %v5099_v3, %v4275_v4  ;;  %v5198_v30 = vld [vmem:[#allocation8 + $0x384] sm:$0xf]  ;;  %v4603_v3 = vld [vmem:[#allocation8 + $0x310] sm:$0xf0] }
 0x14c   :  { %2812 = vmatpush.bf16.msrb.mxu0 %v4290_v19  ;;  %v4354_v19 = vor.u32 %v5121_v9, %v4353_v1  ;;  %v4422_v1 = vor.u32 %v5135_v54, %v4419_v55  ;;  %v4403_v9 = vld [vmem:[#allocation8 + $0x178] sm:$0xf0]  ;;  %v4670_v17 = vor.u32 %v5198_v30, %v4667_v13  ;;  %v5186_v54 = vld [vmem:[#allocation8 + $0x324] sm:$0xf]  ;;  %v4619_v55 = vld [vmem:[#allocation8 + $0x330] sm:$0xf0] }
 0x14d   :  { %2826 = vmatpush.bf16.msrb.mxu1 %v4418_v24  ;;  %v5111_v24 = vld [vmem:[#allocation8 + $0xcc] sm:$0xf]  ;;  %v4406_v15 = vor.u32 %v5131_v8, %v4403_v9  ;;  %v1792_v18 = vpop.f32.mrf.mxu3  ;;  %v4622_v58 = vor.u32 %v5186_v54, %v4619_v55  ;;  %v4545_v9 = vld [vmem:[#allocation8 + $0x288] sm:$0xf]  ;;  %v5213_v55 = vld [vmem:[#allocation8 + $0x3f4] sm:$0xf0] }
 0x14e   :  { %v4326_v33 = vor.u32 %v5111_v24, %v4323_v25  ;;  %v5194_v24 = vld [vmem:[#allocation8 + $0x364] sm:$0xf]  ;;  %v4651_v25 = vld [vmem:[#allocation8 + $0x370] sm:$0xf0]  ;;  %v4529_v13 = vld [vmem:[#allocation8 + $0x268] sm:$0xf] }
 0x14f   :  { %2745 = vmatpush.bf16.msrb.mxu3 %v4618_v20  ;;  %v4654_v2 = vor.u32 %v5194_v24, %v4651_v25  ;;  %v4497_v25 = vld [vmem:[#allocation8 + $0x228] sm:$0xf] }
 0x150   :  { %2813 = vmatpush.bf16.msrb.mxu0 %v4274_v32  ;;  %v1776_v32 = vpop.f32.mrf.mxu2  ;;  %v4721_v54 = vld [vmem:[#allocation8 + $0x3e8] sm:$0xf] }
 0x151   :  { %2827 = vmatpush.bf16.msrb.mxu1 %v4402_v36  ;;  %v4715_v36 = vld [vmem:[#allocation8 + $0x3f0] sm:$0xf0]  ;;  %v1777_v10 = vadd.f32 %v1776_v32, %v1763_v56  ;;  %v5123_v32 = vld [vmem:[#allocation8 + $0x12c] sm:$0xf] }
 0x152   :  { %v4718_v44 = vor.u32 %v5210_v34, %v4715_v36  ;;  %v4593_v34 = vld [vmem:[#allocation8 + $0x2e8] sm:$0xf]  ;;  %v5181_v36 = vld [vmem:[#allocation8 + $0x2f4] sm:$0xf0] }
 0x153   :  { %2746 = vmatpush.bf16.msrb.mxu3 %v4602_v22  ;;  %v1791_v20 = vadd.f32 %v1790_v11, %v1777_v10  ;;  %v4594_v49 = vor.u32 %v5181_v36, %v4593_v34  ;;  %v4355_v11 = vld [vmem:[#allocation8 + $0x118] sm:$0xf0]  ;;  %v5169_v10 = vld [vmem:[#allocation8 + $0x294] sm:$0xf0] }
 0x154   :  { %2814 = vmatpush.bf16.msrb.mxu0 %v4258_v48  ;;  %v4699_v48 = vld [vmem:[#allocation8 + $0x3d0] sm:$0xf0]  ;;  %v4358_v56 = vor.u32 %v5119_v50, %v4355_v11  ;;  %v4595_v34 = vld [vmem:[#allocation8 + $0x2f8] sm:$0xf0] }
 0x155   :  { %2828 = vmatpush.bf16.msrb.mxu1 %v4386_v51  ;;  %v4310_v51 = vor.u32 %v5107_v39, %v4307_v40  ;;  %v4702_v52 = vor.u32 %v5206_v47, %v4699_v48  ;;  %v5190_v39 = vld [vmem:[#allocation8 + $0x344] sm:$0xf]  ;;  %v4635_v40 = vld [vmem:[#allocation8 + $0x350] sm:$0xf0]  ;;  %v4227_v47 = vld [vmem:[#allocation8 + $0x18] sm:$0xf0] }
 0x156   :  { %v4638_v48 = vor.u32 %v5190_v39, %v4635_v40  ;;  %v4230_v57 = vor.u32 %v5087_v35, %v4227_v47  ;;  %v4579_v35 = vld [vmem:[#allocation8 + $0x2d8] sm:$0xf0] }
 0x157   :  { %2795 = vmatpush.bf16.msra.mxu3 %v4718_v44 }
 0x158   :  { %2815 = vmatpush.bf16.msrb.mxu0 %v4242_v61  ;;  %v5202_v61 = vld [vmem:[#allocation8 + $0x3a4] sm:$0xf]  ;;  %v1778_v6 = vpop.f32.mrf.mxu2 }
 0x159   :  { %2829 = vmatpush.bf16.msrb.mxu1 %v4370_v5  ;;  %v4686_v5 = vor.u32 %v5202_v61, %v4683_v63  ;;  %v1779_v14 = vadd.f32 %v1778_v6, %v1765_v62  ;;  %v5173_v61 = vld [vmem:[#allocation8 + $0x2b4] sm:$0xf0] }
 0x15b   :  { %2796 = vmatpush.bf16.msra.mxu3 %v4702_v52  ;;  %v1793_v26 = vadd.f32 %v1792_v18, %v1779_v14  ;;  %v4577_v52 = vld [vmem:[#allocation8 + $0x2c8] sm:$0xf]  ;;  %v5165_v14 = vld [vmem:[#allocation8 + $0x274] sm:$0xf0] }
 0x15c   :  { %2816 = vmatpush.bf16.msrb.mxu0 %v4226_v16  ;;  %v4259_v16 = vld [vmem:[#allocation8 + $0x58] sm:$0xf0] }
 0x15d   :  { %2830 = vmatpush.bf16.msrb.mxu1 %v4354_v19  ;;  %v5127_v19 = vld [vmem:[#allocation8 + $0x14c] sm:$0xf]  ;;  %v1818_v53 = vpop.f32.mrf.mxu1 }
 0x15e   :  { %v1804_v7 = vpop.f32.mrf.mxu0 }
 0x15f   :  { %2817 = vmatmul.bf16.vlgmr.msrb.gmra.mxu0 %v5580_v21  ;;  %2797 = vmatpush.bf16.msra.mxu3 %v4686_v5  ;;  %v1805_v41 = vadd.f32 %v1804_v7, %v1791_v20  ;;  %v5270_v7 = vld [vmem:[#allocation7] sm:$0xf] }
 0x160   :  { %2865 = vmatpush.bf16.msra.mxu0 %v4342_v37  ;;  %2831 = vmatmul.bf16.vlgmr.msrb.gmra.mxu1 %v5583_v45  ;;  %v4387_v37 = vld [vmem:[#allocation8 + $0x158] sm:$0xf0]  ;;  %v354_v8 = vperm.slane %v5270_v7, 3  ;;  %v5163_v7 = vld [vmem:[#allocation8 + $0x26c] sm:$0xf] }
 0x161   :  { %2879 = vmatpush.bf16.msra.mxu1 %v4470_v42  ;;  %v4262_v42 = vor.u32 %v5095_v23, %v4259_v16  ;;  %v4390_v27 = vor.u32 %v5127_v19, %v4387_v37  ;;  %v1909_v43 = vmax.f32 %v1805_v41, 0.0  ;;  %v4530_v23 = vor.u32 %v5165_v14, %v4529_v13  ;;  %v4513_v37 = vld [vmem:[#allocation8 + $0x248] sm:$0xf]  ;;  %v4515_v13 = vld [vmem:[#allocation8 + $0x258] sm:$0xf0] }
 0x162   :  { %v1819_v30 = vadd.f32 %v1818_v53, %v354_v8  ;;  %v4563_v53 = vld [vmem:[#allocation8 + $0x2b8] sm:$0xf0]  ;;  %v4673_v14 = vld [vmem:[#allocation8 + $0x388] sm:$0xf] }
 0x163   :  { %2798 = vmatpush.bf16.msra.mxu3 %v4670_v17 }
 0x164   :  { %2866 = vmatpush.bf16.msra.mxu0 %v4326_v33  ;;  %v4371_v33 = vld [vmem:[#allocation8 + $0x138] sm:$0xf0] }
 0x165   :  { %2880 = vmatpush.bf16.msra.mxu1 %v4454_v38  ;;  %v4246_v38 = vor.u32 %v5091_v28, %v4243_v29  ;;  %v4374_v46 = vor.u32 %v5123_v32, %v4371_v33  ;;  %v1832_v63 = vpop.f32.mrf.mxu2  ;;  %v1846_v4 = vpop.f32.mrf.mxu3  ;;  %v4481_v32 = vld [vmem:[#allocation8 + $0x208] sm:$0xf]  ;;  %v5153_v33 = vld [vmem:[#allocation8 + $0x214] sm:$0xf0] }
 0x166   :  { %v1806_v31 = vpop.f32.mrf.mxu0  ;;  %v1820_v62 = vpop.f32.mrf.mxu1  ;;  %v1833_v16 = vadd.f32 %v1832_v63, %v1819_v30  ;;  %v4482_v39 = vor.u32 %v5153_v33, %v4481_v32  ;;  %v4547_v63 = vld [vmem:[#allocation8 + $0x298] sm:$0xf0]  ;;  %v5159_v30 = vld [vmem:[#allocation8 + $0x24c] sm:$0xf] }
 0x167   :  { %v1807_v22 = vadd.f32 %v1806_v31, %v1793_v26  ;;  %2799 = vmatpush.bf16.msra.mxu3 %v4654_v2  ;;  %v1821_v17 = vadd.f32 %v1820_v62, %v354_v8  ;;  %v5157_v26 = vld [vmem:[#allocation8 + $0x234] sm:$0xf0]  ;;  %v4531_v8 = vld [vmem:[#allocation8 + $0x278] sm:$0xf0]  ;;  %v5211_v32 = vld [vmem:[#allocation8 + $0x3ec] sm:$0xf] }
 0x168   :  { %2867 = vmatpush.bf16.msra.mxu0 %v4310_v51  ;;  %v4498_v28 = vor.u32 %v5157_v26, %v4497_v25  ;;  %v4534_v62 = vor.u32 %v5163_v7, %v4531_v8  ;;  %v5193_v25 = vld [vmem:[#allocation8 + $0x354] sm:$0xf0]  ;;  %v4723_v33 = vld [vmem:[#allocation8 + $0x3f8] sm:$0xf0]  ;;  %v5227_v7 = vld [vmem:[#allocation11 + $0x68] sm:$0xff] }
 0x169   :  { %2881 = vmatpush.bf16.msra.mxu1 %v4438_v0  ;;  %v1913_v44 = vmax.f32 %v1807_v22, 0.0  ;;  %v5177_v0 = vld [vmem:[#allocation8 + $0x2d4] sm:$0xf0]  ;;  %v5179_v22 = vld [vmem:[#allocation8 + $0x2ec] sm:$0xf]  ;;  %v5226_v8 = vld [vmem:[#allocation11 + $0x60] sm:$0xff] }
 0x16a   :  { %v4578_v59 = vor.u32 %v5177_v0, %v4577_v52  ;;  %v5171_v0 = vld [vmem:[#allocation8 + $0x2ac] sm:$0xf] }
 0x16b   :  { %v5597_v51 = vpack.c.bf16 %v1913_v44, %v1909_v43  ;;  %2800 = vmatpush.bf16.msra.mxu3 %v4638_v48  ;;  %v4598_v43 = vor.u32 %v5179_v22, %v4595_v34  ;;  %v4726_v34 = vor.u32 %v5211_v32, %v4723_v33 }
 0x16c   :  { %2868 = vmatpush.bf16.msra.mxu0 %v4294_v60  ;;  %v4561_v60 = vld [vmem:[#allocation8 + $0x2a8] sm:$0xf] }
 0x16d   :  { %2882 = vmatpush.bf16.msra.mxu1 %v4422_v1  ;;  %2733 = vmatmul.bf16.vlgmr.msrb.gmra.mxu2 %v5597_v51  ;;  %v5182_v1 = vld [vmem:[#allocation8 + $0x304] sm:$0xf]  ;;  %v4562_v6 = vor.u32 %v5173_v61, %v4561_v60  ;;  %v1848_v18 = vpop.f32.mrf.mxu3  ;;  %v4722_v60 = vor.u32 %v5213_v55, %v4721_v54  ;;  %v5167_v61 = vld [vmem:[#allocation8 + $0x28c] sm:$0xf]  ;;  %v4611_v55 = vld [vmem:[#allocation8 + $0x318] sm:$0xf0] }
 0x16e   :  { %2837 = vmatpush.bf16.msrb.mxu2 %v4594_v49  ;;  %v4606_v5 = vor.u32 %v5182_v1, %v4603_v3  ;;  %v4705_v3 = vld [vmem:[#allocation8 + $0x3c8] sm:$0xf]  ;;  %v5183_v54 = vld [vmem:[#allocation8 + $0x30c] sm:$0xf] }
 0x16f   :  { %2801 = vmatpush.bf16.msra.mxu3 %v4622_v58 }
 0x170   :  { %2869 = vmatpush.bf16.msra.mxu0 %v4278_v12  ;;  %v4546_v12 = vor.u32 %v5169_v10, %v4545_v9  ;;  %v4689_v9 = vld [vmem:[#allocation8 + $0x3a8] sm:$0xf]  ;;  %v5205_v10 = vld [vmem:[#allocation8 + $0x3b4] sm:$0xf0] }
 0x171   :  { %2883 = vmatpush.bf16.msra.mxu1 %v4406_v15  ;;  %v1834_v15 = vpop.f32.mrf.mxu2 }
 0x172   :  { %2838 = vmatpush.bf16.msrb.mxu2 %v4578_v59  ;;  %v1835_v24 = vadd.f32 %v1834_v15, %v1821_v17  ;;  %v4566_v59 = vor.u32 %v5171_v0, %v4563_v53  ;;  %v5201_v15 = vld [vmem:[#allocation8 + $0x394] sm:$0xf0]  ;;  %v5155_v17 = vld [vmem:[#allocation8 + $0x22c] sm:$0xf]  ;;  %v4627_v53 = vld [vmem:[#allocation8 + $0x338] sm:$0xf0] }
 0x173   :  { %2802 = vmatpush.bf16.msra.mxu3 %v4606_v5  ;;  %v4550_v5 = vor.u32 %v5167_v61, %v4547_v63  ;;  %v5187_v0 = vld [vmem:[#allocation8 + $0x32c] sm:$0xf]  ;;  %v5218_v61 = vld [vmem:[#allocation11 + $0x20] sm:$0xff]  ;;  %v5217_v63 = vld [vmem:[#allocation11 + $0x18] sm:$0xff] }
 0x174   :  { %2870 = vmatpush.bf16.msra.mxu0 %v4262_v42  ;;  %v1847_v42 = vadd.f32 %v1846_v4, %v1833_v16  ;;  %v1849_v29 = vadd.f32 %v1848_v18, %v1835_v24  ;;  %v5209_v4 = vld [vmem:[#allocation8 + $0x3d4] sm:$0xf0]  ;;  %v4674_v16 = vor.u32 %v5201_v15, %v4673_v14  ;;  %v4499_v18 = vld [vmem:[#allocation8 + $0x238] sm:$0xf0]  ;;  %v4641_v24 = vld [vmem:[#allocation8 + $0x348] sm:$0xf] }
 0x175   :  { %2884 = vmatpush.bf16.msra.mxu1 %v4390_v27  ;;  %v5236_v14 = vld [vmem:[#allocation11 + $0xb0] sm:$0xff]  ;;  %v5223_v15 = vld [vmem:[#allocation11 + $0x48] sm:$0xff] }
 0x176   :  { %2839 = vmatpush.bf16.msrb.mxu2 %v4562_v6  ;;  %v4706_v6 = vor.u32 %v5209_v4, %v4705_v3  ;;  %v5229_v3 = vld [vmem:[#allocation11 + $0x78] sm:$0xff]  ;;  %v5216_v4 = vld [vmem:[#allocation11 + $0x10] sm:$0xff] }
 0x178   :  { %2871 = vmatpush.bf16.msra.mxu0 %v4246_v38 }
 0x179   :  { %2885 = vmatpush.bf16.msra.mxu1 %v4374_v46  ;;  %v5175_v46 = vld [vmem:[#allocation8 + $0x2cc] sm:$0xf] }
 0x17a   :  { %2840 = vmatpush.bf16.msrb.mxu2 %v4546_v12  ;;  %v4582_v11 = vor.u32 %v5175_v46, %v4579_v35  ;;  %v4690_v12 = vor.u32 %v5205_v10, %v4689_v9  ;;  %v5199_v46 = vld [vmem:[#allocation8 + $0x38c] sm:$0xf]  ;;  %v4675_v35 = vld [vmem:[#allocation8 + $0x398] sm:$0xf0] }
 0x17b   :  { %v5225_v9 = vld [vmem:[#allocation11 + $0x58] sm:$0xff] }
 0x17c   :  { %2872 = vmatpush.bf16.msra.mxu0 %v4230_v57  ;;  %v5237_v10 = vld [vmem:[#allocation11 + $0xb8] sm:$0xff] }
 0x17d   :  { %2886 = vmatpush.bf16.msra.mxu1 %v4358_v56  ;;  %2789 = vmatmul.bf16.vlgmr.msra.gmra.mxu2 %v5597_v51  ;;  %v1874_v20 = vpop.f32.mrf.mxu1 }
 0x17e   :  { %v1860_v19 = vpop.f32.mrf.mxu0  ;;  %2841 = vmatpush.bf16.msrb.mxu2 %v4530_v23  ;;  %v4518_v23 = vor.u32 %v5159_v30, %v4515_v13  ;;  %v5224_v13 = vld [vmem:[#allocation11 + $0x50] sm:$0xff] }
 0x17f   :  { %2873 = vmatmul.bf16.vlgmr.msra.gmra.mxu0 %v5580_v21  ;;  %v5161_v21 = vld [vmem:[#allocation8 + $0x254] sm:$0xf0]  ;;  %v1861_v41 = vadd.f32 %v1860_v19, %v1847_v42  ;;  %v4657_v19 = vld [vmem:[#allocation8 + $0x368] sm:$0xf]  ;;  %v4483_v42 = vld [vmem:[#allocation8 + $0x218] sm:$0xf0] }
 0x180   :  { %2887 = vmatmul.bf16.vlgmr.msra.gmra.mxu1 %v5583_v45  ;;  %v4514_v45 = vor.u32 %v5161_v21, %v4513_v37  ;;  %v5197_v37 = vld [vmem:[#allocation8 + $0x374] sm:$0xf0]  ;;  %v4502_v21 = vor.u32 %v5155_v17, %v4499_v18 }
 0x181   :  { %v1875_v36 = vadd.f32 %v1874_v20, %v1861_v41  ;;  %v4658_v20 = vor.u32 %v5197_v37, %v4657_v19  ;;  %v4642_v41 = vor.u32 %v5193_v25, %v4641_v24  ;;  %3207 = vmatpush.bf16.msrb.mxu1 %v5229_v3  ;;  %v5222_v19 = vld [vmem:[#allocation11 + $0x40] sm:$0xff] }
 0x182   :  { %2842 = vmatpush.bf16.msrb.mxu2 %v4514_v45  ;;  %v5151_v45 = vld [vmem:[#allocation8 + $0x20c] sm:$0xf]  ;;  %v5234_v37 = vld [vmem:[#allocation11 + $0xa0] sm:$0xff] }
 0x183   :  { %v4486_v26 = vor.u32 %v5151_v45, %v4483_v42  ;;  %v5233_v45 = vld [vmem:[#allocation11 + $0x98] sm:$0xff] }
 0x185   :  { %v1888_v27 = vpop.f32.mrf.mxu2  ;;  %v1902_v2 = vpop.f32.mrf.mxu3 }
 0x186   :  { %v1862_v31 = vpop.f32.mrf.mxu0  ;;  %2843 = vmatpush.bf16.msrb.mxu2 %v4498_v28  ;;  %v1889_v40 = vadd.f32 %v1888_v27, %v1875_v36  ;;  %v1876_v44 = vpop.f32.mrf.mxu1  ;;  %v4625_v27 = vld [vmem:[#allocation8 + $0x328] sm:$0xf]  ;;  %v5189_v28 = vld [vmem:[#allocation8 + $0x334] sm:$0xf0]  ;;  %v5207_v36 = vld [vmem:[#allocation8 + $0x3cc] sm:$0xf] }
 0x187   :  { %v1863_v38 = vadd.f32 %v1862_v31, %v1849_v29  ;;  %v4626_v29 = vor.u32 %v5189_v28, %v4625_v27  ;;  %v5185_v31 = vld [vmem:[#allocation8 + $0x314] sm:$0xf0] }
 0x188   :  { %v1903_v49 = vadd.f32 %v1902_v2, %v1889_v40  ;;  %v4609_v2 = vld [vmem:[#allocation8 + $0x308] sm:$0xf]  ;;  %v5203_v40 = vld [vmem:[#allocation8 + $0x3ac] sm:$0xf]  ;;  %v5232_v27 = vld [vmem:[#allocation11 + $0x90] sm:$0xff] }
 0x189   :  { %v1877_v47 = vadd.f32 %v1876_v44, %v1863_v38  ;;  %v4610_v22 = vor.u32 %v5185_v31, %v4609_v2  ;;  %v4707_v38 = vld [vmem:[#allocation8 + $0x3d8] sm:$0xf0] }
 0x18a   :  { %2844 = vmatpush.bf16.msrb.mxu2 %v4482_v39  ;;  %v1910_v56 = vmax.f32 %v1903_v49, 0.0  ;;  %v4710_v39 = vor.u32 %v5207_v36, %v4707_v38 }
 0x18d   :  { %v1890_v48 = vpop.f32.mrf.mxu2  ;;  %v1904_v52 = vpop.f32.mrf.mxu3  ;;  %2845 = vmatmul.bf16.vlgmr.msrb.gmra.mxu2 %v5597_v51 }
 0x18e   :  { %v1891_v50 = vadd.f32 %v1890_v48, %v1877_v47  ;;  %2893 = vmatpush.bf16.msra.mxu2 %v4598_v43  ;;  %v4691_v43 = vld [vmem:[#allocation8 + $0x3b8] sm:$0xf0]  ;;  %v5195_v47 = vld [vmem:[#allocation8 + $0x36c] sm:$0xf] }
 0x18f   :  { %v4694_v44 = vor.u32 %v5203_v40, %v4691_v43  ;;  %v4659_v48 = vld [vmem:[#allocation8 + $0x378] sm:$0xf0]  ;;  %v5230_v40 = vld [vmem:[#allocation11 + $0x80] sm:$0xff] }
 0x190   :  { %v1905_v57 = vadd.f32 %v1904_v52, %v1891_v50  ;;  %v4662_v49 = vor.u32 %v5195_v47, %v4659_v48  ;;  %v5191_v50 = vld [vmem:[#allocation8 + $0x34c] sm:$0xf]  ;;  %v5245_v43 = vld [vmem:[#allocation11 + $0xf8] sm:$0xff]  ;;  %v5244_v47 = vld [vmem:[#allocation11 + $0xf0] sm:$0xff] }
 0x192   :  { %v1914_v58 = vmax.f32 %v1905_v57, 0.0  ;;  %2894 = vmatpush.bf16.msra.mxu2 %v4582_v11  ;;  %v4643_v11 = vld [vmem:[#allocation8 + $0x358] sm:$0xf0]  ;;  %v4630_v57 = vor.u32 %v5187_v0, %v4627_v53 }
 0x193   :  { %v4646_v52 = vor.u32 %v5191_v50, %v4643_v11  ;;  %v5243_v11 = vld [vmem:[#allocation11 + $0xe8] sm:$0xff] }
 0x194   :  { %v5604_v1 = vpack.c.bf16 %v1914_v58, %v1910_v56  ;;  %v4614_v56 = vor.u32 %v5183_v54, %v4611_v55  ;;  %v5221_v58 = vld [vmem:[#allocation11 + $0x38] sm:$0xff]  ;;  %v5242_v55 = vld [vmem:[#allocation11 + $0xe0] sm:$0xff] }
 0x195   :  { %3193 = vmatpush.bf16.msrb.mxu0 %v5221_v58 }
 0x196   :  { %2747 = vmatmul.bf16.vlgmr.msrb.gmra.mxu3 %v5604_v1  ;;  %2895 = vmatpush.bf16.msra.mxu2 %v4566_v59  ;;  %v5220_v59 = vld [vmem:[#allocation11 + $0x30] sm:$0xff] }
 0x197   :  { %2851 = vmatpush.bf16.msrb.mxu3 %v4722_v60  ;;  %v5219_v60 = vld [vmem:[#allocation11 + $0x28] sm:$0xff] }
 0x199   :  { %3194 = vmatpush.bf16.msrb.mxu0 %v5220_v59 }
 0x19a   :  { %2896 = vmatpush.bf16.msra.mxu2 %v4550_v5  ;;  %v5228_v5 = vld [vmem:[#allocation11 + $0x70] sm:$0xff] }
 0x19b   :  { %2852 = vmatpush.bf16.msrb.mxu3 %v4706_v6  ;;  %3208 = vmatpush.bf16.msrb.mxu1 %v5228_v5  ;;  %v5215_v6 = vld [vmem:[#allocation11 + $0x8] sm:$0xff] }
 0x19d   :  { %3195 = vmatpush.bf16.msrb.mxu0 %v5219_v60 }
 0x19e   :  { %2897 = vmatpush.bf16.msra.mxu2 %v4534_v62  ;;  %v2706_v62 = vpop.f32.mrf.mxu0 }
 0x19f   :  { %2853 = vmatpush.bf16.msrb.mxu3 %v4690_v12  ;;  %3209 = vmatpush.bf16.msrb.mxu1 %v5227_v7 }
 0x1a1   :  { %3196 = vmatpush.bf16.msrb.mxu0 %v5218_v61 }
 0x1a2   :  { %2898 = vmatpush.bf16.msra.mxu2 %v4518_v23  ;;  %v5235_v23 = vld [vmem:[#allocation11 + $0xa8] sm:$0xff] }
 0x1a3   :  { %2854 = vmatpush.bf16.msrb.mxu3 %v4674_v16  ;;  %3210 = vmatpush.bf16.msrb.mxu1 %v5226_v8  ;;  %v5611_v16 = vld [vmem:[#allocation10] sm:$0xf] }
 0x1a4   :  { %v2051_v3 = vperm.slane %v5611_v16, 2 }
 0x1a5   :  { %3197 = vmatpush.bf16.msrb.mxu0 %v5217_v63 }
 0x1a6   :  { %2803 = vmatmul.bf16.vlgmr.msra.gmra.mxu3 %v5604_v1  ;;  %2899 = vmatpush.bf16.msra.mxu2 %v4502_v21  ;;  %v2708_v17 = vpop.f32.mrf.mxu0 }
 0x1a7   :  { %2855 = vmatpush.bf16.msrb.mxu3 %v4658_v20  ;;  %3211 = vmatpush.bf16.msrb.mxu1 %v5225_v9  ;;  %v2049_v20 = vperm.slane %v5611_v16, 0  ;;  %v5240_v9 = vld [vmem:[#allocation11 + $0xd0] sm:$0xff] }
 0x1a9   :  { %3198 = vmatpush.bf16.msrb.mxu0 %v5216_v4  ;;  %v2707_v24 = vadd.f32 %v2706_v62, %v2049_v20 }
 0x1aa   :  { %2900 = vmatpush.bf16.msra.mxu2 %v4486_v26  ;;  %v2709_v26 = vadd.f32 %v2708_v17, %v2049_v20 }
 0x1ab   :  { %2856 = vmatpush.bf16.msrb.mxu3 %v4642_v41  ;;  %3212 = vmatpush.bf16.msrb.mxu1 %v5224_v13 }
 0x1ac   :  { %v2720_v12 = vpop.f32.mrf.mxu1 }
 0x1ad   :  { %2901 = vmatmul.bf16.vlgmr.msra.gmra.mxu2 %v5597_v51  ;;  %v4678_v51 = vor.u32 %v5199_v46, %v4675_v35  ;;  %3199 = vmatpush.bf16.msrb.mxu0 %v5215_v6  ;;  %v2721_v41 = vadd.f32 %v2720_v12, %v2707_v24  ;;  %v2050_v46 = vperm.slane %v5611_v16, 1  ;;  %v5241_v6 = vld [vmem:[#allocation11 + $0xd8] sm:$0xff] }
 0x1ae   :  { %3221 = vmatpush.bf16.msrb.mxu2 %v5237_v10 }
 0x1af   :  { %2857 = vmatpush.bf16.msrb.mxu3 %v4626_v29  ;;  %3213 = vmatpush.bf16.msrb.mxu1 %v5223_v15 }
 0x1b2   :  { %3222 = vmatpush.bf16.msrb.mxu2 %v5236_v14 }
 0x1b3   :  { %2858 = vmatpush.bf16.msrb.mxu3 %v4610_v22  ;;  %3214 = vmatpush.bf16.msrb.mxu1 %v5222_v19  ;;  %v5231_v22 = vld [vmem:[#allocation11 + $0x88] sm:$0xff]  ;;  %v5238_v19 = vld [vmem:[#allocation11 + $0xc0] sm:$0xff] }
 0x1b4   :  { %v2722_v18 = vpop.f32.mrf.mxu1 }
 0x1b5   :  { %v2723_v28 = vadd.f32 %v2722_v18, %v2709_v26 }
 0x1b6   :  { %2859 = vmatmul.bf16.vlgmr.msrb.gmra.mxu3 %v5604_v1  ;;  %3223 = vmatpush.bf16.msrb.mxu2 %v5235_v23 }
 0x1b7   :  { %2907 = vmatpush.bf16.msra.mxu3 %v4726_v34 }
 0x1ba   :  { %3224 = vmatpush.bf16.msrb.mxu2 %v5234_v37 }
 0x1bb   :  { %2908 = vmatpush.bf16.msra.mxu3 %v4710_v39 }
 0x1bc   :  { %v2762_v25 = vpop.f32.mrf.mxu0 }
 0x1bd   :  { %v2776_v29 = vpop.f32.mrf.mxu1  ;;  %v2763_v50 = vadd.f32 %v2762_v25, %v2050_v46 }
 0x1be   :  { %3225 = vmatpush.bf16.msrb.mxu2 %v5233_v45 }
 0x1bf   :  { %2909 = vmatpush.bf16.msra.mxu3 %v4694_v44  ;;  %v2777_v0 = vadd.f32 %v2776_v29, %v2763_v50 }
 0x1c2   :  { %3226 = vmatpush.bf16.msrb.mxu2 %v5232_v27 }
 0x1c3   :  { %2910 = vmatpush.bf16.msra.mxu3 %v4678_v51 }
 0x1c4   :  { %v2764_v44 = vpop.f32.mrf.mxu0 }
 0x1c5   :  { %v2778_v51 = vpop.f32.mrf.mxu1 }
 0x1c6   :  { %3227 = vmatpush.bf16.msrb.mxu2 %v5231_v22 }
 0x1c7   :  { %2911 = vmatpush.bf16.msra.mxu3 %v4662_v49 }
 0x1ca   :  { %3228 = vmatpush.bf16.msrb.mxu2 %v5230_v40 }
 0x1cb   :  { %2912 = vmatpush.bf16.msra.mxu3 %v4646_v52  ;;  %v2765_v52 = vadd.f32 %v2764_v44, %v2050_v46 }
 0x1cf   :  { %2913 = vmatpush.bf16.msra.mxu3 %v4630_v57  ;;  %v2779_v57 = vadd.f32 %v2778_v51, %v2765_v52 }
 0x1d3   :  { %2914 = vmatpush.bf16.msra.mxu3 %v4614_v56 }
 0x1d6   :  { %2915 = vmatmul.bf16.vlgmr.msra.gmra.mxu3 %v5604_v1  ;;  %v5214_v1 = vld [vmem:[#allocation11] sm:$0xff] }
 0x1d7   :  { %3200 = vmatpush.bf16.msrb.mxu0 %v5214_v1  ;;  %3235 = vmatpush.bf16.msrb.mxu3 %v5245_v43 }
 0x1db   :  { %3236 = vmatpush.bf16.msrb.mxu3 %v5244_v47 }
 0x1dc   :  { %v2818_v53 = vpop.f32.mrf.mxu0 }
 0x1dd   :  { %v2832_v61 = vpop.f32.mrf.mxu1  ;;  %v2819_v8 = vadd.f32 %v2818_v53, %v2051_v3 }
 0x1df   :  { %3237 = vmatpush.bf16.msrb.mxu3 %v5243_v11  ;;  %v2833_v12 = vadd.f32 %v2832_v61, %v2819_v8 }
 0x1e3   :  { %3238 = vmatpush.bf16.msrb.mxu3 %v5242_v55 }
 0x1e4   :  { %v2820_v1 = vpop.f32.mrf.mxu0 }
 0x1e5   :  { %v2821_v62 = vadd.f32 %v2820_v1, %v2051_v3  ;;  %v2834_v13 = vpop.f32.mrf.mxu1 }
 0x1e7   :  { %3239 = vmatpush.bf16.msrb.mxu3 %v5241_v6  ;;  %v2835_v15 = vadd.f32 %v2834_v13, %v2821_v62 }
 0x1eb   :  { %3240 = vmatpush.bf16.msrb.mxu3 %v5240_v9 }
 0x1f0   :  { %v2734_v30 = vpop.f32.mrf.mxu2 }
 0x1f1   :  { %v2735_v2 = vadd.f32 %v2734_v30, %v2721_v41  ;;  %v5239_v30 = vld [vmem:[#allocation11 + $0xc8] sm:$0xff]  ;;  %v2052_v41 = vperm.slane %v5611_v16, 3  ;;  %v5261_v16 = vld [vmem:[%s5629_s6] ss:$0 sm:$0xff]  ;;  %s5461_s6 = smov [#allocation13]  }
 0x1f2   :  { %3241 = vmatpush.bf16.msrb.mxu3 %v5239_v30  ;;  %s3273_s10 = sshll.u32 %s5461_s6, 4  ;;  %s3274_s10 = int_to_ptr.vmem [resolvable:$true] %s3273_s10 }
 0x1f6   :  { %3242 = vmatpush.bf16.msrb.mxu3 %v5238_v19 }
 0x1f8   :  { %v2736_v21 = vpop.f32.mrf.mxu2 }
 0x1f9   :  { %v2737_v32 = vadd.f32 %v2736_v21, %v2723_v28 }
 0x1fc   :  { %v2874_v24 = vpop.f32.mrf.mxu0 }
 0x1fd   :  { %v2888_v25 = vpop.f32.mrf.mxu1  ;;  %v2875_v28 = vadd.f32 %v2874_v24, %v2052_v41 }
 0x200   :  { %v2790_v31 = vpop.f32.mrf.mxu2 }
 0x201   :  { %v2791_v54 = vadd.f32 %v2790_v31, %v2777_v0  ;;  %v2889_v31 = vadd.f32 %v2888_v25, %v2875_v28 }
 0x204   :  { %v2876_v27 = vpop.f32.mrf.mxu0 }
 0x208   :  { %v2792_v48 = vpop.f32.mrf.mxu2 }
 0x209   :  { %v2793_v56 = vadd.f32 %v2792_v48, %v2779_v57 }
 0x210   :  { %v2846_v63 = vpop.f32.mrf.mxu2 }
 0x211   :  { %v2847_v23 = vadd.f32 %v2846_v63, %v2833_v12 }
 0x218   :  { %v2848_v14 = vpop.f32.mrf.mxu2 }
 0x219   :  { %v2748_v42 = vpop.f32.mrf.mxu3  ;;  %v2849_v17 = vadd.f32 %v2848_v14, %v2835_v15 }
 0x21a   :  { %v2749_v33 = vadd.f32 %v2748_v42, %v2735_v2  ;;  %v2877_v2 = vadd.f32 %v2876_v27, %v2052_v41 }
 0x21c   :  { %v2921_v38 = vmax.f32 %v2749_v33, 0.0 }
 0x221   :  { %v2750_v34 = vpop.f32.mrf.mxu3 }
 0x222   :  { %v2751_v36 = vadd.f32 %v2750_v34, %v2737_v32  ;;  %v2890_v32 = vpop.f32.mrf.mxu1 }
 0x223   :  { %v2891_v22 = vadd.f32 %v2890_v32, %v2877_v2 }
 0x224   :  { %v2925_v39 = vmax.f32 %v2751_v36, 0.0 }
 0x226   :  { %v2929_v35 = vpack.c.bf16 %v2925_v39, %v2921_v38 }
 0x228   :  { %3201 = vmatmul.bf16.vlgmr.msrb.gmra.mxu0 %v2929_v35 }
 0x229   :  { %v2804_v49 = vpop.f32.mrf.mxu3 }
 0x22a   :  { %v2805_v58 = vadd.f32 %v2804_v49, %v2791_v54 }
 0x22c   :  { %v2922_v4 = vmax.f32 %v2805_v58, 0.0 }
 0x230   :  { %v2902_v26 = vpop.f32.mrf.mxu2 }
 0x231   :  { %v2806_v59 = vpop.f32.mrf.mxu3  ;;  %v2903_v34 = vadd.f32 %v2902_v26, %v2889_v31 }
 0x232   :  { %v2807_v60 = vadd.f32 %v2806_v59, %v2793_v56 }
 0x234   :  { %v2926_v5 = vmax.f32 %v2807_v60, 0.0 }
 0x236   :  { %v2930_v7 = vpack.c.bf16 %v2926_v5, %v2922_v4 }
 0x238   :  { %3215 = vmatmul.bf16.vlgmr.msrb.gmra.mxu1 %v2930_v7  ;;  %v2904_v33 = vpop.f32.mrf.mxu2 }
 0x239   :  { %v2860_v10 = vpop.f32.mrf.mxu3  ;;  %v2905_v36 = vadd.f32 %v2904_v33, %v2891_v22 }
 0x23a   :  { %v2861_v18 = vadd.f32 %v2860_v10, %v2847_v23 }
 0x23c   :  { %v2923_v20 = vmax.f32 %v2861_v18, 0.0 }
 0x241   :  { %v2862_v37 = vpop.f32.mrf.mxu3 }
 0x242   :  { %v2863_v21 = vadd.f32 %v2862_v37, %v2849_v17 }
 0x244   :  { %v2927_v45 = vmax.f32 %v2863_v21, 0.0 }
 0x246   :  { %v2931_v42 = vpack.c.bf16 %v2927_v45, %v2923_v20 }
 0x248   :  { %3229 = vmatmul.bf16.vlgmr.msrb.gmra.mxu2 %v2931_v42 }
 0x259   :  { %v2916_v29 = vpop.f32.mrf.mxu3 }
 0x25a   :  { %v2917_v38 = vadd.f32 %v2916_v29, %v2903_v34 }
 0x25c   :  { %v2924_v43 = vmax.f32 %v2917_v38, 0.0 }
 0x261   :  { %v2918_v39 = vpop.f32.mrf.mxu3 }
 0x262   :  { %v2919_v40 = vadd.f32 %v2918_v39, %v2905_v36 }
 0x264   :  { %v2928_v44 = vmax.f32 %v2919_v40, 0.0 }
 0x266   :  { %v2932_v46 = vpack.c.bf16 %v2928_v44, %v2924_v43 }
 0x268   :  { %3243 = vmatmul.bf16.vlgmr.msrb.gmra.mxu3 %v2932_v46 }
 0x2a5   :  { %v3202_v35 = vpop.f32.mrf.mxu0 }
 0x2a6   :  { %v3203_v48 = vadd.f32 %v5261_v16, %v3202_v35 }
 0x2ad   :  { %v3204_v11 = vpop.f32.mrf.mxu0 }
 0x2ae   :  { %v3205_v57 = vadd.f32 %v5261_v16, %v3204_v11 }
 0x2b5   :  { %v3216_v51 = vpop.f32.mrf.mxu1 }
 0x2b6   :  { %v3217_v49 = vadd.f32 %v3216_v51, %v3203_v48 }
 0x2bd   :  { %v3218_v53 = vpop.f32.mrf.mxu1 }
 0x2be   :  { %v3219_v55 = vadd.f32 %v3218_v53, %v3205_v57 }
 0x2cb   :  { %v3230_v47 = vpop.f32.mrf.mxu2 }
 0x2cc   :  { %v3231_v50 = vadd.f32 %v3230_v47, %v3217_v49 }
 0x2d3   :  { %v3232_v54 = vpop.f32.mrf.mxu2 }
 0x2d4   :  { %v3233_v56 = vadd.f32 %v3232_v54, %v3219_v55 }
 0x2eb   :  { %v3244_v52 = vpop.f32.mrf.mxu3 }
 0x2ec   :  { %v3245_v0 = vadd.f32 %v3244_v52, %v3231_v50 }
 0x2ee   :  { %3249 = vmax.xlane.f32.xlu0 %v3245_v0 }
 0x2f3   :  { %v3246_v58 = vpop.f32.mrf.mxu3 }
 0x2f4   :  { %v3247_v59 = vadd.f32 %v3246_v58, %v3233_v56 }
 0x2f6   :  { %3251 = vmax.xlane.f32.xlu0 %v3247_v59 }
 0x361   :  { %v3250_v60 = vpop.xlane.xlu0 %3249 }
 0x362   :  { %v3253_v61 = vsub.f32 %v3245_v0, %v3250_v60 }
 0x364   :  { %v3255_v63 = vmul.f32 1.442695, %v3253_v61 }
 0x366   :  { %5262 = vpow2.f32 %v3255_v63 }
 0x369   :  { %v3252_v3 = vpop.xlane.xlu0 %3251 }
 0x36a   :  { %v3254_v4 = vsub.f32 %v3247_v59, %v3252_v3 }
 0x36c   :  { %v5263_v5 = vpop.eup %5262  ;;  %v3257_v6 = vmul.f32 1.442695, %v3254_v4 }
 0x36d   :  { %3259 = vadd.xlane.f32.xlu1 %v5263_v5 }
 0x36e   :  { %5264 = vpow2.f32 %v3257_v6 }
 0x374   :  { %v5265_v7 = vpop.eup %5264 }
 0x375   :  { %3261 = vadd.xlane.f32.xlu1 %v5265_v7 }
 0x3e0   :  { %v3260_v1 = vpop.xlane.xlu1 %3259 }
 0x3e1   :  { %5266 = vrcp.f32 %v3260_v1 }
 0x3e7   :  { %v5267_v8 = vpop.eup %5266 }
 0x3e8   :  { %v3265_v9 = vmul.f32 %v5267_v8, %v5263_v5  ;;  %v3262_v10 = vpop.xlane.xlu1 %3261 }
 0x3e9   :  { %5268 = vrcp.f32 %v3262_v10 }
 0x3ea   :  { %3267 = vst [vmem:[#allocation13] sm:$0xff] %v3265_v9 }
 0x3ef   :  { %v5269_v62 = vpop.eup %5268 }
 0x3f0   :  { %v3266_v12 = vmul.f32 %v5269_v62, %v5265_v7 }
 0x3f2   :  { %3268 = vst [vmem:[#allocation13 + $0x8] sm:$0xff] %v3266_v12 }
 0x3f3   :  { %3281 = dma.vmem_to_hbm [thread:$0]  %s3274_s10, 256, %s3276_s13, [#allocation4], %s5462_s14, %s5462_s14, %s5463_s15  }
 0x3f4   :  { %5447 = dma.done.wait [#allocation4], 256  }
 0x3f5   :  { %5448 = vsyncadd [#allocation4], 4294967040 }
 0x3f6   :  { %3286 = vsyncpa [#allocation3], 1 }
 0x3f7   :  { %3287 = vsyncpa [#allocation6], 1 }
 0x3f8   :  { %3288 = vsyncpa [#allocation9], 1 }
 0x3f9   :  { %3289 = vsyncpa [#allocation12], 1 }
 0x3fa   :  { %3290 = vsyncpa [#allocation4], 1 }

</bundles_post_ra>
